<compile_context>
chip_gen: v5e
topology: v5e:2x2
jax: 0.10.0
libtpu: 0.0.40
codegen_flags: <defaults>
</compile_context>

<pallas_src>
import functools

import jax
import jax.numpy as jnp
from jax.experimental import pallas as pl
from jax.experimental.pallas import tpu as pltpu

LEAKY_SLOPE = 0.2
BN_EPS = 1e-5


# ----------------------------------------------------------------------------
# Probe: does Mosaic lower a 2-D axis-0 take_along_axis gather at this shape?
# ----------------------------------------------------------------------------
_GATHER_PROBE_CACHE = {}


def _gather_probe_kernel(src_ref, idxcol_ref, o_ref):
    n, cout = src_ref.shape
    ind = jnp.broadcast_to(idxcol_ref[...], (n, cout))
    o_ref[...] = jnp.take_along_axis(src_ref[...], ind, axis=0, mode="clip")


def _vectorized_gather_supported(n, cout):
    """True iff the tile-wide take_along_axis gather (f32 src, i32 idx, axis 0)
    compiles at this (n, cout).  Probed once per shape with a tiny standalone
    kernel; any failure selects the one-hot-matmul fallback (always lowers)."""
    key = (int(n), int(cout))
    if key not in _GATHER_PROBE_CACHE:
        try:
            fn = pl.pallas_call(
                _gather_probe_kernel,
                out_shape=jax.ShapeDtypeStruct((n, cout), jnp.float32))
            jax.jit(fn).lower(
                jax.ShapeDtypeStruct((n, cout), jnp.float32),
                jax.ShapeDtypeStruct((n, 1), jnp.int32),
            ).compile()
            _GATHER_PROBE_CACHE[key] = True
        except Exception:
            _GATHER_PROBE_CACHE[key] = False
    return _GATHER_PROBE_CACHE[key]


# ----------------------------------------------------------------------------
# EdgeConv: project per point -> vectorized K-neighbor gather -> max -> +center
#           -> LeakyReLU.  One batch element per grid step.
# ----------------------------------------------------------------------------
def _edgeconv_kernel(x_ref, idx_ref, wn_ref, wc_ref, b_ref, o_ref, *, use_gather):
    # x_ref  : (1, N, Cpad) bf16  point features
    # idx_ref: (1, N, K)   int32  kNN indices (plain VMEM input, not SMEM prefetch)
    # wn_ref : (Cpad, Cout) bf16  folded  W_diff * bn_scale
    # wc_ref : (Cpad, Cout) bf16  folded (W_center - W_diff) * bn_scale
    # b_ref  : (1, Cout)    f32   folded BN bias
    # o_ref  : (1, N, Cout) bf16
    n, k = idx_ref.shape[1], idx_ref.shape[2]
    cout = wn_ref.shape[1]

    xb = x_ref[0]                                                       # (N, Cpad) bf16
    # Per-POINT projections (exact per-edge rewrite; signed BN scale already folded,
    # so the neighbor max over `pn` and the post-max LeakyReLU are exact).
    pn = jnp.dot(xb, wn_ref[...], preferred_element_type=jnp.float32)   # (N, Cout) f32
    center = jnp.dot(xb, wc_ref[...], preferred_element_type=jnp.float32) + b_ref[...]

    idx2d = idx_ref[0]                                                  # (N, K) int32
    best = None
    for kk in range(k):                         # K is small & static -> unrolled
        if use_gather:
            # Tile-wide vectorized gather of the kk-th neighbor's projection.
            ind = jnp.broadcast_to(idx2d[:, kk:kk + 1], (n, cout))
            g = jnp.take_along_axis(pn, ind, axis=0, mode="clip")       # (N, Cout)
        else:
            # Fallback: one-hot matmul gather (the idle MXU does the row selection).
            sel = (jnp.broadcast_to(idx2d[:, kk:kk + 1], (n, n)) ==
                   jax.lax.broadcasted_iota(jnp.int32, (n, n), 1)).astype(jnp.float32)
            g = jnp.dot(sel, pn, preferred_element_type=jnp.float32)    # (N, Cout)
        best = g if best is None else jnp.maximum(best, g)

    y = best + center
    y = jnp.where(y > 0, y, LEAKY_SLOPE * y)     # LeakyReLU after the max (monotone -> exact)
    o_ref[0] = y.astype(o_ref.dtype)             # single full-tile bf16 store


def edgeconv(x, idx, w2, scale, bias):
    """x: (B,N,C) float, idx: (B,N,K) int32, w2: (2C,Cout) [diff rows ; center rows].
    Returns (B, N, Cout) bf16  ==  max_K(LeakyReLU(BN(conv1x1(edge_feature))))."""
    b, n, c = x.shape
    k = idx.shape[-1]
    c2, cout = w2.shape
    assert c2 == 2 * c

    # Fold the (signed) BN scale into the conv weights; split for the exact rewrite.
    w_d, w_c = w2[:c], w2[c:]
    wn = (w_d * scale[None, :]).astype(jnp.bfloat16)
    wc = ((w_c - w_d) * scale[None, :]).astype(jnp.bfloat16)
    bias2 = bias[None, :].astype(jnp.float32)

    # bf16 MXU inputs; pad the tiny contracting dim of conv1 (3 -> 8).
    cpad = -(-c // 8) * 8
    xb = x.astype(jnp.bfloat16)
    if cpad != c:
        xb = jnp.pad(xb, ((0, 0), (0, 0), (0, cpad - c)))
        wn = jnp.pad(wn, ((0, cpad - c), (0, 0)))
        wc = jnp.pad(wc, ((0, cpad - c), (0, 0)))

    idx = idx.astype(jnp.int32)
    use_gather = _vectorized_gather_supported(n, cout)

    kernel = functools.partial(_edgeconv_kernel, use_gather=use_gather)
    return pl.pallas_call(
        kernel,
        out_shape=jax.ShapeDtypeStruct((b, n, cout), jnp.bfloat16),
        grid=(b,),
        in_specs=[
            pl.BlockSpec((1, n, cpad), lambda bi: (bi, 0, 0)),
            pl.BlockSpec((1, n, k), lambda bi: (bi, 0, 0)),
            pl.BlockSpec((cpad, cout), lambda bi: (0, 0)),
            pl.BlockSpec((cpad, cout), lambda bi: (0, 0)),
            pl.BlockSpec((1, cout), lambda bi: (0, 0)),
        ],
        out_specs=pl.BlockSpec((1, n, cout), lambda bi: (bi, 0, 0)),
        compiler_params=pltpu.CompilerParams(
            dimension_semantics=("parallel",)),     # batch axis -> megacore-shardable
    )(xb, idx, wn, wc, bias2)


# ----------------------------------------------------------------------------
# conv5 + global max/avg pool: fused concat via a bf16 VMEM slab -> one 512-deep
# matmul per tile; running max / running sum in VMEM scratch.
# ----------------------------------------------------------------------------
def _conv5_pool_kernel(x1_ref, x2_ref, x3_ref, x4_ref, w_ref, b_ref, o_ref,
                       cat_scr, mx_scr, sm_scr):
    nt = pl.program_id(1)

    @pl.when(nt == 0)
    def _():
        mx_scr[...] = jnp.full_like(mx_scr, -jnp.inf)
        sm_scr[...] = jnp.zeros_like(sm_scr)

    # Fused channel concat into a bf16 slab, then ONE (tn,512)@(512,emb) MXU matmul.
    c1 = x1_ref.shape[-1]; c2 = x2_ref.shape[-1]
    c3 = x3_ref.shape[-1]; c4 = x4_ref.shape[-1]
    cat_scr[:, 0:c1] = x1_ref[0]
    cat_scr[:, c1:c1 + c2] = x2_ref[0]
    cat_scr[:, c1 + c2:c1 + c2 + c3] = x3_ref[0]
    cat_scr[:, c1 + c2 + c3:c1 + c2 + c3 + c4] = x4_ref[0]

    y = jnp.dot(cat_scr[...], w_ref[...], preferred_element_type=jnp.float32) + b_ref[...]
    y = jnp.where(y > 0, y, LEAKY_SLOPE * y)                       # (tn, emb)

    mx_scr[...] = jnp.maximum(mx_scr[...], jnp.max(y, axis=0, keepdims=True))
    sm_scr[...] = sm_scr[...] + jnp.sum(y, axis=0, keepdims=True)

    @pl.when(nt == pl.num_programs(1) - 1)
    def _():
        n_total = pl.num_programs(1) * x1_ref.shape[1]             # avg over all N points
        avg = sm_scr[...] / n_total
        o_ref[0] = jnp.concatenate([mx_scr[...], avg], axis=-1)


def conv5_pool(x1, x2, x3, x4, w, scale, bias, *, tile_n=512):
    """(B,N,64/64/128/256) bf16 -> (B, 2*emb) f32: conv1x1(512->emb)+BN+LeakyReLU,
    then global max & avg pooling over N."""
    b, n, _ = x1.shape
    cin, emb = w.shape
    cs = (x1.shape[-1], x2.shape[-1], x3.shape[-1], x4.shape[-1])
    assert sum(cs) == cin
    w_f = (w * scale[None, :]).astype(jnp.bfloat16)                # fold BN scale
    bias2 = bias[None, :].astype(jnp.float32)
    tn = min(tile_n, n)
    assert n % tn == 0, "N must be divisible by the conv5 N-tile"

    out = pl.pallas_call(
        _conv5_pool_kernel,
        out_shape=jax.ShapeDtypeStruct((b, 1, 2 * emb), jnp.float32),
        grid=(b, n // tn),
        in_specs=[
            pl.BlockSpec((1, tn, cs[0]), lambda bi, ti: (bi, ti, 0)),
            pl.BlockSpec((1, tn, cs[1]), lambda bi, ti: (bi, ti, 0)),
            pl.BlockSpec((1, tn, cs[2]), lambda bi, ti: (bi, ti, 0)),
            pl.BlockSpec((1, tn, cs[3]), lambda bi, ti: (bi, ti, 0)),
            pl.BlockSpec((cin, emb), lambda bi, ti: (0, 0)),
            pl.BlockSpec((1, emb), lambda bi, ti: (0, 0)),
        ],
        out_specs=pl.BlockSpec((1, 1, 2 * emb), lambda bi, ti: (bi, 0, 0)),
        scratch_shapes=[pltpu.VMEM((tn, cin), jnp.bfloat16),
                        pltpu.VMEM((1, emb), jnp.float32),
                        pltpu.VMEM((1, emb), jnp.float32)],
        compiler_params=pltpu.CompilerParams(
            dimension_semantics=("parallel", "arbitrary")),
    )(x1.astype(jnp.bfloat16), x2.astype(jnp.bfloat16),
      x3.astype(jnp.bfloat16), x4.astype(jnp.bfloat16), w_f, bias2)
    return out[:, 0, :]


# ----------------------------------------------------------------------------
# kNN glue (index computation only; the gather itself is fused into edgeconv)
# ----------------------------------------------------------------------------
def _knn_idx(x, k):
    # TODO(synk): tiled Pallas pairwise-distance + running-top-K kernel to avoid the
    # (B, N, N) f32 distance matrix at large N; distances kept f32 so neighbor
    # selection matches the reference.
    inner = jnp.einsum("bnc,bmc->bnm", x, x)
    sq = jnp.sum(x * x, axis=-1)
    neg_dist = 2.0 * inner - sq[:, :, None] - sq[:, None, :]
    _, idx = jax.lax.top_k(neg_dist, k)
    return idx.astype(jnp.int32)                                   # (B, N, k)


# ----------------------------------------------------------------------------
# Deterministic synthetic parameters + full forward
# ----------------------------------------------------------------------------
def _folded_bn(key, cout):
    k1, k2, k3, k4 = jax.random.split(key, 4)
    gamma = jax.random.uniform(k1, (cout,), jnp.float32, 0.5, 1.5)
    beta = 0.1 * jax.random.normal(k2, (cout,), jnp.float32)
    mean = 0.1 * jax.random.normal(k3, (cout,), jnp.float32)
    var = jax.random.uniform(k4, (cout,), jnp.float32, 0.5, 1.5)
    scale = gamma / jnp.sqrt(var + BN_EPS)                         # any sign is handled
    bias = beta - mean * scale
    return scale, bias


def _make_conv_block(key, cin, cout):
    kw, kb = jax.random.split(key)
    w = jax.random.normal(kw, (cin, cout), jnp.float32) / jnp.sqrt(cin)
    scale, bias = _folded_bn(kb, cout)
    return (w, scale, bias)


def init_params(key, num_channel=3, emb_dims=128):
    ks = jax.random.split(key, 5)
    return {
        "conv1": _make_conv_block(ks[0], num_channel * 2, 64),
        "conv2": _make_conv_block(ks[1], 64 * 2, 64),
        "conv3": _make_conv_block(ks[2], 64 * 2, 128),
        "conv4": _make_conv_block(ks[3], 128 * 2, 256),
        "conv5": _make_conv_block(ks[4], 512, emb_dims),
    }


def dgcnn_forward(x_bcn, params, point_k, conv5_tile_n=512):
    # x_bcn: (B, C, N) -- PyTorch layout
    x = jnp.transpose(x_bcn, (0, 2, 1))                            # (B, N, C) channels-last

    def stage(feat, p):
        idx = _knn_idx(feat.astype(jnp.float32), point_k)          # kNN in f32
        return edgeconv(feat, idx, *p)                             # (B, N, Cout) bf16

    x1 = stage(x, params["conv1"])                                 # (B, N, 64)
    x2 = stage(x1, params["conv2"])                                # (B, N, 64)
    x3 = stage(x2, params["conv3"])                                # (B, N, 128)
    x4 = stage(x3, params["conv4"])                                # (B, N, 256)
    return conv5_pool(x1, x2, x3, x4, *params["conv5"],
                      tile_n=conv5_tile_n)                         # (B, 2*emb)


if __name__ == "__main__":
    B, C, N = 2, 3, 16          # batch, input channels (xyz), num points
    POINT_K = 4                 # args.point_k
    EMB = 128                   # args.point_emb_dims

    # Warm the gather-support probe cache outside of jit tracing.
    for _cout in (64, 128, 256):
        _vectorized_gather_supported(N, _cout)

    key = jax.random.PRNGKey(0)
    kx, kp = jax.random.split(key)
    x = jax.random.normal(kx, (B, C, N), jnp.float32)              # PyTorch-layout input
    params = init_params(kp, num_channel=C, emb_dims=EMB)

    fwd = jax.jit(lambda xx: dgcnn_forward(xx, params, POINT_K))
    out = jax.block_until_ready(fwd(x))
    assert out.shape == (B, 2 * EMB), out.shape
    assert bool(jnp.all(jnp.isfinite(out)))
    print("KERNEL_OK")
</pallas_src>

<mosaic_0001>
module attributes {stable_mosaic.version = 11 : i64} {
  func.func @_edgeconv_kernel(%arg0: i32, %arg1: memref<1x16x8xbf16, #tpu.memory_space<vmem>>, %arg2: memref<1x16x4xi32, #tpu.memory_space<vmem>>, %arg3: memref<8x64xbf16, #tpu.memory_space<vmem>>, %arg4: memref<8x64xbf16, #tpu.memory_space<vmem>>, %arg5: memref<1x64xf32, #tpu.memory_space<vmem>>, %arg6: memref<1x16x64xbf16, #tpu.memory_space<vmem>>) attributes {dimension_semantics = [#tpu.dimension_semantics<parallel>], iteration_bounds = array<i64: 2>, scalar_prefetch = 0 : i64, scratch_operands = 0 : i64, tpu.core_type = #tpu.core_type<tc>, window_params = [{transform_indices = @transform_0, window_bounds = array<i64: 1, 16, 8>}, {transform_indices = @transform_1, window_bounds = array<i64: 1, 16, 4>}, {pipeline_mode = #tpu.pipeline_mode<synchronous>, transform_indices = @transform_2, window_bounds = array<i64: 8, 64>}, {pipeline_mode = #tpu.pipeline_mode<synchronous>, transform_indices = @transform_3, window_bounds = array<i64: 8, 64>}, {pipeline_mode = #tpu.pipeline_mode<synchronous>, transform_indices = @transform_4, window_bounds = array<i64: 1, 64>}, {transform_indices = @transform_5, window_bounds = array<i64: 1, 16, 64>}]} {
    %c0 = arith.constant 0 : index
    %c0_0 = arith.constant 0 : index
    %c0_1 = arith.constant 0 : index
    %0 = vector.load %arg1[%c0, %c0_0, %c0_1] : memref<1x16x8xbf16, #tpu.memory_space<vmem>>, vector<1x16x8xbf16>
    %1 = vector.shape_cast %0 : vector<1x16x8xbf16> to vector<16x8xbf16>
    %c0_2 = arith.constant 0 : index
    %c0_3 = arith.constant 0 : index
    %2 = vector.load %arg3[%c0_2, %c0_3] : memref<8x64xbf16, #tpu.memory_space<vmem>>, vector<8x64xbf16>
    %cst = arith.constant dense<0.000000e+00> : vector<16x64xf32>
    %3 = tpu.matmul %1, %2, %cst {dimension_numbers = #tpu.dot_dimension_numbers<[1], [0], [0], [1], [0, 0, 1, 1], [], []>} : vector<16x8xbf16>, vector<8x64xbf16>, vector<16x64xf32> -> vector<16x64xf32>
    %c0_4 = arith.constant 0 : index
    %c0_5 = arith.constant 0 : index
    %4 = vector.load %arg4[%c0_4, %c0_5] : memref<8x64xbf16, #tpu.memory_space<vmem>>, vector<8x64xbf16>
    %cst_6 = arith.constant dense<0.000000e+00> : vector<16x64xf32>
    %5 = tpu.matmul %1, %4, %cst_6 {dimension_numbers = #tpu.dot_dimension_numbers<[1], [0], [0], [1], [0, 0, 1, 1], [], []>} : vector<16x8xbf16>, vector<8x64xbf16>, vector<16x64xf32> -> vector<16x64xf32>
    %c0_7 = arith.constant 0 : index
    %c0_8 = arith.constant 0 : index
    %6 = vector.load %arg5[%c0_7, %c0_8] : memref<1x64xf32, #tpu.memory_space<vmem>>, vector<1x64xf32>
    %7 = vector.broadcast %6 : vector<1x64xf32> to vector<16x64xf32>
    %8 = arith.addf %5, %7 : vector<16x64xf32>
    %c0_9 = arith.constant 0 : index
    %c0_10 = arith.constant 0 : index
    %c0_11 = arith.constant 0 : index
    %9 = vector.load %arg2[%c0_9, %c0_10, %c0_11] : memref<1x16x4xi32, #tpu.memory_space<vmem>>, vector<1x16x4xi32>
    %10 = vector.shape_cast %9 : vector<1x16x4xi32> to vector<16x4xi32>
    %11 = vector.extract_strided_slice %10 {offsets = [0, 0], sizes = [16, 1], strides = [1, 1]} : vector<16x4xi32> to vector<16x1xi32>
    %12 = vector.shape_cast %11 : vector<16x1xi32> to vector<16x1xi32>
    %13 = vector.broadcast %12 : vector<16x1xi32> to vector<16x16xi32>
    %14 = tpu.iota {dimensions = array<i32: 1>} : vector<16x16xi32>
    %15 = arith.cmpi eq, %13, %14 : vector<16x16xi32>
    %16 = arith.extui %15 : vector<16x16xi1> to vector<16x16xi32>
    %17 = arith.sitofp %16 : vector<16x16xi32> to vector<16x16xf32>
    %cst_12 = arith.constant dense<0.000000e+00> : vector<16x64xf32>
    %18 = tpu.matmul %17, %3, %cst_12 {dimension_numbers = #tpu.dot_dimension_numbers<[1], [0], [0], [1], [0, 0, 1, 1], [], []>} : vector<16x16xf32>, vector<16x64xf32>, vector<16x64xf32> -> vector<16x64xf32>
    %19 = vector.extract_strided_slice %10 {offsets = [0, 1], sizes = [16, 1], strides = [1, 1]} : vector<16x4xi32> to vector<16x1xi32>
    %20 = vector.shape_cast %19 : vector<16x1xi32> to vector<16x1xi32>
    %21 = vector.broadcast %20 : vector<16x1xi32> to vector<16x16xi32>
    %22 = tpu.iota {dimensions = array<i32: 1>} : vector<16x16xi32>
    %23 = arith.cmpi eq, %21, %22 : vector<16x16xi32>
    %24 = arith.extui %23 : vector<16x16xi1> to vector<16x16xi32>
    %25 = arith.sitofp %24 : vector<16x16xi32> to vector<16x16xf32>
    %cst_13 = arith.constant dense<0.000000e+00> : vector<16x64xf32>
    %26 = tpu.matmul %25, %3, %cst_13 {dimension_numbers = #tpu.dot_dimension_numbers<[1], [0], [0], [1], [0, 0, 1, 1], [], []>} : vector<16x16xf32>, vector<16x64xf32>, vector<16x64xf32> -> vector<16x64xf32>
    %27 = arith.maximumf %18, %26 : vector<16x64xf32>
    %28 = vector.extract_strided_slice %10 {offsets = [0, 2], sizes = [16, 1], strides = [1, 1]} : vector<16x4xi32> to vector<16x1xi32>
    %29 = vector.shape_cast %28 : vector<16x1xi32> to vector<16x1xi32>
    %30 = vector.broadcast %29 : vector<16x1xi32> to vector<16x16xi32>
    %31 = tpu.iota {dimensions = array<i32: 1>} : vector<16x16xi32>
    %32 = arith.cmpi eq, %30, %31 : vector<16x16xi32>
    %33 = arith.extui %32 : vector<16x16xi1> to vector<16x16xi32>
    %34 = arith.sitofp %33 : vector<16x16xi32> to vector<16x16xf32>
    %cst_14 = arith.constant dense<0.000000e+00> : vector<16x64xf32>
    %35 = tpu.matmul %34, %3, %cst_14 {dimension_numbers = #tpu.dot_dimension_numbers<[1], [0], [0], [1], [0, 0, 1, 1], [], []>} : vector<16x16xf32>, vector<16x64xf32>, vector<16x64xf32> -> vector<16x64xf32>
    %36 = arith.maximumf %27, %35 : vector<16x64xf32>
    %37 = vector.extract_strided_slice %10 {offsets = [0, 3], sizes = [16, 1], strides = [1, 1]} : vector<16x4xi32> to vector<16x1xi32>
    %38 = vector.shape_cast %37 : vector<16x1xi32> to vector<16x1xi32>
    %39 = vector.broadcast %38 : vector<16x1xi32> to vector<16x16xi32>
    %40 = tpu.iota {dimensions = array<i32: 1>} : vector<16x16xi32>
    %41 = arith.cmpi eq, %39, %40 : vector<16x16xi32>
    %42 = arith.extui %41 : vector<16x16xi1> to vector<16x16xi32>
    %43 = arith.sitofp %42 : vector<16x16xi32> to vector<16x16xf32>
    %cst_15 = arith.constant dense<0.000000e+00> : vector<16x64xf32>
    %44 = tpu.matmul %43, %3, %cst_15 {dimension_numbers = #tpu.dot_dimension_numbers<[1], [0], [0], [1], [0, 0, 1, 1], [], []>} : vector<16x16xf32>, vector<16x64xf32>, vector<16x64xf32> -> vector<16x64xf32>
    %45 = arith.maximumf %36, %44 : vector<16x64xf32>
    %46 = arith.addf %45, %8 : vector<16x64xf32>
    %cst_16 = arith.constant 0.000000e+00 : f32
    %47 = vector.broadcast %cst_16 : f32 to vector<16x64xf32>
    %48 = arith.cmpf ogt, %46, %47 : vector<16x64xf32>
    %cst_17 = arith.constant 2.000000e-01 : f32
    %49 = vector.broadcast %cst_17 : f32 to vector<16x64xf32>
    %50 = arith.mulf %49, %46 : vector<16x64xf32>
    %51 = arith.select %48, %46, %50 : vector<16x64xi1>, vector<16x64xf32>
    %52 = arith.truncf %51 : vector<16x64xf32> to vector<16x64xbf16>
    %c0_18 = arith.constant 0 : index
    %c0_19 = arith.constant 0 : index
    %c0_20 = arith.constant 0 : index
    %53 = vector.load %arg6[%c0_18, %c0_19, %c0_20] : memref<1x16x64xbf16, #tpu.memory_space<vmem>>, vector<1x16x64xbf16>
    %54 = vector.shape_cast %53 : vector<1x16x64xbf16> to vector<16x64xbf16>
    %55 = vector.shape_cast %52 : vector<16x64xbf16> to vector<1x16x64xbf16>
    tpu.vector_store %arg6[%c0_18, %c0_19, %c0_20], %55 {strides = array<i32>} : memref<1x16x64xbf16, #tpu.memory_space<vmem>>, vector<1x16x64xbf16>,
    return
  }
  func.func @transform_0(%arg0: i32) -> (i32, i32, i32) {
    %c0_i32 = arith.constant 0 : i32
    %c0_i32_0 = arith.constant 0 : i32
    %c0_i32_1 = arith.constant 0 : i32
    return %arg0, %c0_i32, %c0_i32_0 : i32, i32, i32
  }
  func.func @transform_1(%arg0: i32) -> (i32, i32, i32) {
    %c0_i32 = arith.constant 0 : i32
    %c0_i32_0 = arith.constant 0 : i32
    %c0_i32_1 = arith.constant 0 : i32
    return %arg0, %c0_i32, %c0_i32_0 : i32, i32, i32
  }
  func.func @transform_2(%arg0: i32) -> (i32, i32) {
    %c0_i32 = arith.constant 0 : i32
    %c0_i32_0 = arith.constant 0 : i32
    %c0_i32_1 = arith.constant 0 : i32
    return %c0_i32, %c0_i32_0 : i32, i32
  }
  func.func @transform_3(%arg0: i32) -> (i32, i32) {
    %c0_i32 = arith.constant 0 : i32
    %c0_i32_0 = arith.constant 0 : i32
    %c0_i32_1 = arith.constant 0 : i32
    return %c0_i32, %c0_i32_0 : i32, i32
  }
  func.func @transform_4(%arg0: i32) -> (i32, i32) {
    %c0_i32 = arith.constant 0 : i32
    %c0_i32_0 = arith.constant 0 : i32
    %c0_i32_1 = arith.constant 0 : i32
    return %c0_i32, %c0_i32_0 : i32, i32
  }
  func.func @transform_5(%arg0: i32) -> (i32, i32, i32) {
    %c0_i32 = arith.constant 0 : i32
    %c0_i32_0 = arith.constant 0 : i32
    %c0_i32_1 = arith.constant 0 : i32
    return %arg0, %c0_i32, %c0_i32_0 : i32, i32, i32
  }
}

module attributes {stable_mosaic.version = 11 : i64} {
  func.func @_edgeconv_kernel(%arg0: i32, %arg1: memref<1x16x128xbf16, #tpu.memory_space<vmem>>, %arg2: memref<1x16x4xi32, #tpu.memory_space<vmem>>, %arg3: memref<128x256xbf16, #tpu.memory_space<vmem>>, %arg4: memref<128x256xbf16, #tpu.memory_space<vmem>>, %arg5: memref<1x256xf32, #tpu.memory_space<vmem>>, %arg6: memref<1x16x256xbf16, #tpu.memory_space<vmem>>) attributes {dimension_semantics = [#tpu.dimension_semantics<parallel>], iteration_bounds = array<i64: 2>, scalar_prefetch = 0 : i64, scratch_operands = 0 : i64, tpu.core_type = #tpu.core_type<tc>, window_params = [{transform_indices = @transform_0, window_bounds = array<i64: 1, 16, 128>}, {transform_indices = @transform_1, window_bounds = array<i64: 1, 16, 4>}, {pipeline_mode = #tpu.pipeline_mode<synchronous>, transform_indices = @transform_2, window_bounds = array<i64: 128, 256>}, {pipeline_mode = #tpu.pipeline_mode<synchronous>, transform_indices = @transform_3, window_bounds = array<i64: 128, 256>}, {pipeline_mode = #tpu.pipeline_mode<synchronous>, transform_indices = @transform_4, window_bounds = array<i64: 1, 256>}, {transform_indices = @transform_5, window_bounds = array<i64: 1, 16, 256>}]} {
    %c0 = arith.constant 0 : index
    %c0_0 = arith.constant 0 : index
    %c0_1 = arith.constant 0 : index
    %0 = vector.load %arg1[%c0, %c0_0, %c0_1] : memref<1x16x128xbf16, #tpu.memory_space<vmem>>, vector<1x16x128xbf16>
    %1 = vector.shape_cast %0 : vector<1x16x128xbf16> to vector<16x128xbf16>
    %c0_2 = arith.constant 0 : index
    %c0_3 = arith.constant 0 : index
    %2 = vector.load %arg3[%c0_2, %c0_3] : memref<128x256xbf16, #tpu.memory_space<vmem>>, vector<128x256xbf16>
    %cst = arith.constant dense<0.000000e+00> : vector<16x256xf32>
    %3 = tpu.matmul %1, %2, %cst {dimension_numbers = #tpu.dot_dimension_numbers<[1], [0], [0], [1], [0, 0, 1, 1], [], []>} : vector<16x128xbf16>, vector<128x256xbf16>, vector<16x256xf32> -> vector<16x256xf32>
    %c0_4 = arith.constant 0 : index
    %c0_5 = arith.constant 0 : index
    %4 = vector.load %arg4[%c0_4, %c0_5] : memref<128x256xbf16, #tpu.memory_space<vmem>>, vector<128x256xbf16>
    %cst_6 = arith.constant dense<0.000000e+00> : vector<16x256xf32>
    %5 = tpu.matmul %1, %4, %cst_6 {dimension_numbers = #tpu.dot_dimension_numbers<[1], [0], [0], [1], [0, 0, 1, 1], [], []>} : vector<16x128xbf16>, vector<128x256xbf16>, vector<16x256xf32> -> vector<16x256xf32>
    %c0_7 = arith.constant 0 : index
    %c0_8 = arith.constant 0 : index
    %6 = vector.load %arg5[%c0_7, %c0_8] : memref<1x256xf32, #tpu.memory_space<vmem>>, vector<1x256xf32>
    %7 = vector.broadcast %6 : vector<1x256xf32> to vector<16x256xf32>
    %8 = arith.addf %5, %7 : vector<16x256xf32>
    %c0_9 = arith.constant 0 : index
    %c0_10 = arith.constant 0 : index
    %c0_11 = arith.constant 0 : index
    %9 = vector.load %arg2[%c0_9, %c0_10, %c0_11] : memref<1x16x4xi32, #tpu.memory_space<vmem>>, vector<1x16x4xi32>
    %10 = vector.shape_cast %9 : vector<1x16x4xi32> to vector<16x4xi32>
    %11 = vector.extract_strided_slice %10 {offsets = [0, 0], sizes = [16, 1], strides = [1, 1]} : vector<16x4xi32> to vector<16x1xi32>
    %12 = vector.shape_cast %11 : vector<16x1xi32> to vector<16x1xi32>
    %13 = vector.broadcast %12 : vector<16x1xi32> to vector<16x16xi32>
    %14 = tpu.iota {dimensions = array<i32: 1>} : vector<16x16xi32>
    %15 = arith.cmpi eq, %13, %14 : vector<16x16xi32>
    %16 = arith.extui %15 : vector<16x16xi1> to vector<16x16xi32>
    %17 = arith.sitofp %16 : vector<16x16xi32> to vector<16x16xf32>
    %cst_12 = arith.constant dense<0.000000e+00> : vector<16x256xf32>
    %18 = tpu.matmul %17, %3, %cst_12 {dimension_numbers = #tpu.dot_dimension_numbers<[1], [0], [0], [1], [0, 0, 1, 1], [], []>} : vector<16x16xf32>, vector<16x256xf32>, vector<16x256xf32> -> vector<16x256xf32>
    %19 = vector.extract_strided_slice %10 {offsets = [0, 1], sizes = [16, 1], strides = [1, 1]} : vector<16x4xi32> to vector<16x1xi32>
    %20 = vector.shape_cast %19 : vector<16x1xi32> to vector<16x1xi32>
    %21 = vector.broadcast %20 : vector<16x1xi32> to vector<16x16xi32>
    %22 = tpu.iota {dimensions = array<i32: 1>} : vector<16x16xi32>
    %23 = arith.cmpi eq, %21, %22 : vector<16x16xi32>
    %24 = arith.extui %23 : vector<16x16xi1> to vector<16x16xi32>
    %25 = arith.sitofp %24 : vector<16x16xi32> to vector<16x16xf32>
    %cst_13 = arith.constant dense<0.000000e+00> : vector<16x256xf32>
    %26 = tpu.matmul %25, %3, %cst_13 {dimension_numbers = #tpu.dot_dimension_numbers<[1], [0], [0], [1], [0, 0, 1, 1], [], []>} : vector<16x16xf32>, vector<16x256xf32>, vector<16x256xf32> -> vector<16x256xf32>
    %27 = arith.maximumf %18, %26 : vector<16x256xf32>
    %28 = vector.extract_strided_slice %10 {offsets = [0, 2], sizes = [16, 1], strides = [1, 1]} : vector<16x4xi32> to vector<16x1xi32>
    %29 = vector.shape_cast %28 : vector<16x1xi32> to vector<16x1xi32>
    %30 = vector.broadcast %29 : vector<16x1xi32> to vector<16x16xi32>
    %31 = tpu.iota {dimensions = array<i32: 1>} : vector<16x16xi32>
    %32 = arith.cmpi eq, %30, %31 : vector<16x16xi32>
    %33 = arith.extui %32 : vector<16x16xi1> to vector<16x16xi32>
    %34 = arith.sitofp %33 : vector<16x16xi32> to vector<16x16xf32>
    %cst_14 = arith.constant dense<0.000000e+00> : vector<16x256xf32>
    %35 = tpu.matmul %34, %3, %cst_14 {dimension_numbers = #tpu.dot_dimension_numbers<[1], [0], [0], [1], [0, 0, 1, 1], [], []>} : vector<16x16xf32>, vector<16x256xf32>, vector<16x256xf32> -> vector<16x256xf32>
    %36 = arith.maximumf %27, %35 : vector<16x256xf32>
    %37 = vector.extract_strided_slice %10 {offsets = [0, 3], sizes = [16, 1], strides = [1, 1]} : vector<16x4xi32> to vector<16x1xi32>
    %38 = vector.shape_cast %37 : vector<16x1xi32> to vector<16x1xi32>
    %39 = vector.broadcast %38 : vector<16x1xi32> to vector<16x16xi32>
    %40 = tpu.iota {dimensions = array<i32: 1>} : vector<16x16xi32>
    %41 = arith.cmpi eq, %39, %40 : vector<16x16xi32>
    %42 = arith.extui %41 : vector<16x16xi1> to vector<16x16xi32>
    %43 = arith.sitofp %42 : vector<16x16xi32> to vector<16x16xf32>
    %cst_15 = arith.constant dense<0.000000e+00> : vector<16x256xf32>
    %44 = tpu.matmul %43, %3, %cst_15 {dimension_numbers = #tpu.dot_dimension_numbers<[1], [0], [0], [1], [0, 0, 1, 1], [], []>} : vector<16x16xf32>, vector<16x256xf32>, vector<16x256xf32> -> vector<16x256xf32>
    %45 = arith.maximumf %36, %44 : vector<16x256xf32>
    %46 = arith.addf %45, %8 : vector<16x256xf32>
    %cst_16 = arith.constant 0.000000e+00 : f32
    %47 = vector.broadcast %cst_16 : f32 to vector<16x256xf32>
    %48 = arith.cmpf ogt, %46, %47 : vector<16x256xf32>
    %cst_17 = arith.constant 2.000000e-01 : f32
    %49 = vector.broadcast %cst_17 : f32 to vector<16x256xf32>
    %50 = arith.mulf %49, %46 : vector<16x256xf32>
    %51 = arith.select %48, %46, %50 : vector<16x256xi1>, vector<16x256xf32>
    %52 = arith.truncf %51 : vector<16x256xf32> to vector<16x256xbf16>
    %c0_18 = arith.constant 0 : index
    %c0_19 = arith.constant 0 : index
    %c0_20 = arith.constant 0 : index
    %53 = vector.load %arg6[%c0_18, %c0_19, %c0_20] : memref<1x16x256xbf16, #tpu.memory_space<vmem>>, vector<1x16x256xbf16>
    %54 = vector.shape_cast %53 : vector<1x16x256xbf16> to vector<16x256xbf16>
    %55 = vector.shape_cast %52 : vector<16x256xbf16> to vector<1x16x256xbf16>
    tpu.vector_store %arg6[%c0_18, %c0_19, %c0_20], %55 {strides = array<i32>} : memref<1x16x256xbf16, #tpu.memory_space<vmem>>, vector<1x16x256xbf16>,
    return
  }
  func.func @transform_0(%arg0: i32) -> (i32, i32, i32) {
    %c0_i32 = arith.constant 0 : i32
    %c0_i32_0 = arith.constant 0 : i32
    %c0_i32_1 = arith.constant 0 : i32
    return %arg0, %c0_i32, %c0_i32_0 : i32, i32, i32
  }
  func.func @transform_1(%arg0: i32) -> (i32, i32, i32) {
    %c0_i32 = arith.constant 0 : i32
    %c0_i32_0 = arith.constant 0 : i32
    %c0_i32_1 = arith.constant 0 : i32
    return %arg0, %c0_i32, %c0_i32_0 : i32, i32, i32
  }
  func.func @transform_2(%arg0: i32) -> (i32, i32) {
    %c0_i32 = arith.constant 0 : i32
    %c0_i32_0 = arith.constant 0 : i32
    %c0_i32_1 = arith.constant 0 : i32
    return %c0_i32, %c0_i32_0 : i32, i32
  }
  func.func @transform_3(%arg0: i32) -> (i32, i32) {
    %c0_i32 = arith.constant 0 : i32
    %c0_i32_0 = arith.constant 0 : i32
    %c0_i32_1 = arith.constant 0 : i32
    return %c0_i32, %c0_i32_0 : i32, i32
  }
  func.func @transform_4(%arg0: i32) -> (i32, i32) {
    %c0_i32 = arith.constant 0 : i32
    %c0_i32_0 = arith.constant 0 : i32
    %c0_i32_1 = arith.constant 0 : i32
    return %c0_i32, %c0_i32_0 : i32, i32
  }
  func.func @transform_5(%arg0: i32) -> (i32, i32, i32) {
    %c0_i32 = arith.constant 0 : i32
    %c0_i32_0 = arith.constant 0 : i32
    %c0_i32_1 = arith.constant 0 : i32
    return %arg0, %c0_i32, %c0_i32_0 : i32, i32, i32
  }
}

module attributes {stable_mosaic.version = 11 : i64} {
  func.func @_edgeconv_kernel(%arg0: i32, %arg1: memref<1x16x64xbf16, #tpu.memory_space<vmem>>, %arg2: memref<1x16x4xi32, #tpu.memory_space<vmem>>, %arg3: memref<64x64xbf16, #tpu.memory_space<vmem>>, %arg4: memref<64x64xbf16, #tpu.memory_space<vmem>>, %arg5: memref<1x64xf32, #tpu.memory_space<vmem>>, %arg6: memref<1x16x64xbf16, #tpu.memory_space<vmem>>) attributes {dimension_semantics = [#tpu.dimension_semantics<parallel>], iteration_bounds = array<i64: 2>, scalar_prefetch = 0 : i64, scratch_operands = 0 : i64, tpu.core_type = #tpu.core_type<tc>, window_params = [{transform_indices = @transform_0, window_bounds = array<i64: 1, 16, 64>}, {transform_indices = @transform_1, window_bounds = array<i64: 1, 16, 4>}, {pipeline_mode = #tpu.pipeline_mode<synchronous>, transform_indices = @transform_2, window_bounds = array<i64: 64, 64>}, {pipeline_mode = #tpu.pipeline_mode<synchronous>, transform_indices = @transform_3, window_bounds = array<i64: 64, 64>}, {pipeline_mode = #tpu.pipeline_mode<synchronous>, transform_indices = @transform_4, window_bounds = array<i64: 1, 64>}, {transform_indices = @transform_5, window_bounds = array<i64: 1, 16, 64>}]} {
    %c0 = arith.constant 0 : index
    %c0_0 = arith.constant 0 : index
    %c0_1 = arith.constant 0 : index
    %0 = vector.load %arg1[%c0, %c0_0, %c0_1] : memref<1x16x64xbf16, #tpu.memory_space<vmem>>, vector<1x16x64xbf16>
    %1 = vector.shape_cast %0 : vector<1x16x64xbf16> to vector<16x64xbf16>
    %c0_2 = arith.constant 0 : index
    %c0_3 = arith.constant 0 : index
    %2 = vector.load %arg3[%c0_2, %c0_3] : memref<64x64xbf16, #tpu.memory_space<vmem>>, vector<64x64xbf16>
    %cst = arith.constant dense<0.000000e+00> : vector<16x64xf32>
    %3 = tpu.matmul %1, %2, %cst {dimension_numbers = #tpu.dot_dimension_numbers<[1], [0], [0], [1], [0, 0, 1, 1], [], []>} : vector<16x64xbf16>, vector<64x64xbf16>, vector<16x64xf32> -> vector<16x64xf32>
    %c0_4 = arith.constant 0 : index
    %c0_5 = arith.constant 0 : index
    %4 = vector.load %arg4[%c0_4, %c0_5] : memref<64x64xbf16, #tpu.memory_space<vmem>>, vector<64x64xbf16>
    %cst_6 = arith.constant dense<0.000000e+00> : vector<16x64xf32>
    %5 = tpu.matmul %1, %4, %cst_6 {dimension_numbers = #tpu.dot_dimension_numbers<[1], [0], [0], [1], [0, 0, 1, 1], [], []>} : vector<16x64xbf16>, vector<64x64xbf16>, vector<16x64xf32> -> vector<16x64xf32>
    %c0_7 = arith.constant 0 : index
    %c0_8 = arith.constant 0 : index
    %6 = vector.load %arg5[%c0_7, %c0_8] : memref<1x64xf32, #tpu.memory_space<vmem>>, vector<1x64xf32>
    %7 = vector.broadcast %6 : vector<1x64xf32> to vector<16x64xf32>
    %8 = arith.addf %5, %7 : vector<16x64xf32>
    %c0_9 = arith.constant 0 : index
    %c0_10 = arith.constant 0 : index
    %c0_11 = arith.constant 0 : index
    %9 = vector.load %arg2[%c0_9, %c0_10, %c0_11] : memref<1x16x4xi32, #tpu.memory_space<vmem>>, vector<1x16x4xi32>
    %10 = vector.shape_cast %9 : vector<1x16x4xi32> to vector<16x4xi32>
    %11 = vector.extract_strided_slice %10 {offsets = [0, 0], sizes = [16, 1], strides = [1, 1]} : vector<16x4xi32> to vector<16x1xi32>
    %12 = vector.shape_cast %11 : vector<16x1xi32> to vector<16x1xi32>
    %13 = vector.broadcast %12 : vector<16x1xi32> to vector<16x16xi32>
    %14 = tpu.iota {dimensions = array<i32: 1>} : vector<16x16xi32>
    %15 = arith.cmpi eq, %13, %14 : vector<16x16xi32>
    %16 = arith.extui %15 : vector<16x16xi1> to vector<16x16xi32>
    %17 = arith.sitofp %16 : vector<16x16xi32> to vector<16x16xf32>
    %cst_12 = arith.constant dense<0.000000e+00> : vector<16x64xf32>
    %18 = tpu.matmul %17, %3, %cst_12 {dimension_numbers = #tpu.dot_dimension_numbers<[1], [0], [0], [1], [0, 0, 1, 1], [], []>} : vector<16x16xf32>, vector<16x64xf32>, vector<16x64xf32> -> vector<16x64xf32>
    %19 = vector.extract_strided_slice %10 {offsets = [0, 1], sizes = [16, 1], strides = [1, 1]} : vector<16x4xi32> to vector<16x1xi32>
    %20 = vector.shape_cast %19 : vector<16x1xi32> to vector<16x1xi32>
    %21 = vector.broadcast %20 : vector<16x1xi32> to vector<16x16xi32>
    %22 = tpu.iota {dimensions = array<i32: 1>} : vector<16x16xi32>
    %23 = arith.cmpi eq, %21, %22 : vector<16x16xi32>
    %24 = arith.extui %23 : vector<16x16xi1> to vector<16x16xi32>
    %25 = arith.sitofp %24 : vector<16x16xi32> to vector<16x16xf32>
    %cst_13 = arith.constant dense<0.000000e+00> : vector<16x64xf32>
    %26 = tpu.matmul %25, %3, %cst_13 {dimension_numbers = #tpu.dot_dimension_numbers<[1], [0], [0], [1], [0, 0, 1, 1], [], []>} : vector<16x16xf32>, vector<16x64xf32>, vector<16x64xf32> -> vector<16x64xf32>
    %27 = arith.maximumf %18, %26 : vector<16x64xf32>
    %28 = vector.extract_strided_slice %10 {offsets = [0, 2], sizes = [16, 1], strides = [1, 1]} : vector<16x4xi32> to vector<16x1xi32>
    %29 = vector.shape_cast %28 : vector<16x1xi32> to vector<16x1xi32>
    %30 = vector.broadcast %29 : vector<16x1xi32> to vector<16x16xi32>
    %31 = tpu.iota {dimensions = array<i32: 1>} : vector<16x16xi32>
    %32 = arith.cmpi eq, %30, %31 : vector<16x16xi32>
    %33 = arith.extui %32 : vector<16x16xi1> to vector<16x16xi32>
    %34 = arith.sitofp %33 : vector<16x16xi32> to vector<16x16xf32>
    %cst_14 = arith.constant dense<0.000000e+00> : vector<16x64xf32>
    %35 = tpu.matmul %34, %3, %cst_14 {dimension_numbers = #tpu.dot_dimension_numbers<[1], [0], [0], [1], [0, 0, 1, 1], [], []>} : vector<16x16xf32>, vector<16x64xf32>, vector<16x64xf32> -> vector<16x64xf32>
    %36 = arith.maximumf %27, %35 : vector<16x64xf32>
    %37 = vector.extract_strided_slice %10 {offsets = [0, 3], sizes = [16, 1], strides = [1, 1]} : vector<16x4xi32> to vector<16x1xi32>
    %38 = vector.shape_cast %37 : vector<16x1xi32> to vector<16x1xi32>
    %39 = vector.broadcast %38 : vector<16x1xi32> to vector<16x16xi32>
    %40 = tpu.iota {dimensions = array<i32: 1>} : vector<16x16xi32>
    %41 = arith.cmpi eq, %39, %40 : vector<16x16xi32>
    %42 = arith.extui %41 : vector<16x16xi1> to vector<16x16xi32>
    %43 = arith.sitofp %42 : vector<16x16xi32> to vector<16x16xf32>
    %cst_15 = arith.constant dense<0.000000e+00> : vector<16x64xf32>
    %44 = tpu.matmul %43, %3, %cst_15 {dimension_numbers = #tpu.dot_dimension_numbers<[1], [0], [0], [1], [0, 0, 1, 1], [], []>} : vector<16x16xf32>, vector<16x64xf32>, vector<16x64xf32> -> vector<16x64xf32>
    %45 = arith.maximumf %36, %44 : vector<16x64xf32>
    %46 = arith.addf %45, %8 : vector<16x64xf32>
    %cst_16 = arith.constant 0.000000e+00 : f32
    %47 = vector.broadcast %cst_16 : f32 to vector<16x64xf32>
    %48 = arith.cmpf ogt, %46, %47 : vector<16x64xf32>
    %cst_17 = arith.constant 2.000000e-01 : f32
    %49 = vector.broadcast %cst_17 : f32 to vector<16x64xf32>
    %50 = arith.mulf %49, %46 : vector<16x64xf32>
    %51 = arith.select %48, %46, %50 : vector<16x64xi1>, vector<16x64xf32>
    %52 = arith.truncf %51 : vector<16x64xf32> to vector<16x64xbf16>
    %c0_18 = arith.constant 0 : index
    %c0_19 = arith.constant 0 : index
    %c0_20 = arith.constant 0 : index
    %53 = vector.load %arg6[%c0_18, %c0_19, %c0_20] : memref<1x16x64xbf16, #tpu.memory_space<vmem>>, vector<1x16x64xbf16>
    %54 = vector.shape_cast %53 : vector<1x16x64xbf16> to vector<16x64xbf16>
    %55 = vector.shape_cast %52 : vector<16x64xbf16> to vector<1x16x64xbf16>
    tpu.vector_store %arg6[%c0_18, %c0_19, %c0_20], %55 {strides = array<i32>} : memref<1x16x64xbf16, #tpu.memory_space<vmem>>, vector<1x16x64xbf16>,
    return
  }
  func.func @transform_0(%arg0: i32) -> (i32, i32, i32) {
    %c0_i32 = arith.constant 0 : i32
    %c0_i32_0 = arith.constant 0 : i32
    %c0_i32_1 = arith.constant 0 : i32
    return %arg0, %c0_i32, %c0_i32_0 : i32, i32, i32
  }
  func.func @transform_1(%arg0: i32) -> (i32, i32, i32) {
    %c0_i32 = arith.constant 0 : i32
    %c0_i32_0 = arith.constant 0 : i32
    %c0_i32_1 = arith.constant 0 : i32
    return %arg0, %c0_i32, %c0_i32_0 : i32, i32, i32
  }
  func.func @transform_2(%arg0: i32) -> (i32, i32) {
    %c0_i32 = arith.constant 0 : i32
    %c0_i32_0 = arith.constant 0 : i32
    %c0_i32_1 = arith.constant 0 : i32
    return %c0_i32, %c0_i32_0 : i32, i32
  }
  func.func @transform_3(%arg0: i32) -> (i32, i32) {
    %c0_i32 = arith.constant 0 : i32
    %c0_i32_0 = arith.constant 0 : i32
    %c0_i32_1 = arith.constant 0 : i32
    return %c0_i32, %c0_i32_0 : i32, i32
  }
  func.func @transform_4(%arg0: i32) -> (i32, i32) {
    %c0_i32 = arith.constant 0 : i32
    %c0_i32_0 = arith.constant 0 : i32
    %c0_i32_1 = arith.constant 0 : i32
    return %c0_i32, %c0_i32_0 : i32, i32
  }
  func.func @transform_5(%arg0: i32) -> (i32, i32, i32) {
    %c0_i32 = arith.constant 0 : i32
    %c0_i32_0 = arith.constant 0 : i32
    %c0_i32_1 = arith.constant 0 : i32
    return %arg0, %c0_i32, %c0_i32_0 : i32, i32, i32
  }
}

module attributes {stable_mosaic.version = 11 : i64} {
  func.func @_edgeconv_kernel(%arg0: i32, %arg1: memref<1x16x64xbf16, #tpu.memory_space<vmem>>, %arg2: memref<1x16x4xi32, #tpu.memory_space<vmem>>, %arg3: memref<64x128xbf16, #tpu.memory_space<vmem>>, %arg4: memref<64x128xbf16, #tpu.memory_space<vmem>>, %arg5: memref<1x128xf32, #tpu.memory_space<vmem>>, %arg6: memref<1x16x128xbf16, #tpu.memory_space<vmem>>) attributes {dimension_semantics = [#tpu.dimension_semantics<parallel>], iteration_bounds = array<i64: 2>, scalar_prefetch = 0 : i64, scratch_operands = 0 : i64, tpu.core_type = #tpu.core_type<tc>, window_params = [{transform_indices = @transform_0, window_bounds = array<i64: 1, 16, 64>}, {transform_indices = @transform_1, window_bounds = array<i64: 1, 16, 4>}, {pipeline_mode = #tpu.pipeline_mode<synchronous>, transform_indices = @transform_2, window_bounds = array<i64: 64, 128>}, {pipeline_mode = #tpu.pipeline_mode<synchronous>, transform_indices = @transform_3, window_bounds = array<i64: 64, 128>}, {pipeline_mode = #tpu.pipeline_mode<synchronous>, transform_indices = @transform_4, window_bounds = array<i64: 1, 128>}, {transform_indices = @transform_5, window_bounds = array<i64: 1, 16, 128>}]} {
    %c0 = arith.constant 0 : index
    %c0_0 = arith.constant 0 : index
    %c0_1 = arith.constant 0 : index
    %0 = vector.load %arg1[%c0, %c0_0, %c0_1] : memref<1x16x64xbf16, #tpu.memory_space<vmem>>, vector<1x16x64xbf16>
    %1 = vector.shape_cast %0 : vector<1x16x64xbf16> to vector<16x64xbf16>
    %c0_2 = arith.constant 0 : index
    %c0_3 = arith.constant 0 : index
    %2 = vector.load %arg3[%c0_2, %c0_3] : memref<64x128xbf16, #tpu.memory_space<vmem>>, vector<64x128xbf16>
    %cst = arith.constant dense<0.000000e+00> : vector<16x128xf32>
    %3 = tpu.matmul %1, %2, %cst {dimension_numbers = #tpu.dot_dimension_numbers<[1], [0], [0], [1], [0, 0, 1, 1], [], []>} : vector<16x64xbf16>, vector<64x128xbf16>, vector<16x128xf32> -> vector<16x128xf32>
    %c0_4 = arith.constant 0 : index
    %c0_5 = arith.constant 0 : index
    %4 = vector.load %arg4[%c0_4, %c0_5] : memref<64x128xbf16, #tpu.memory_space<vmem>>, vector<64x128xbf16>
    %cst_6 = arith.constant dense<0.000000e+00> : vector<16x128xf32>
    %5 = tpu.matmul %1, %4, %cst_6 {dimension_numbers = #tpu.dot_dimension_numbers<[1], [0], [0], [1], [0, 0, 1, 1], [], []>} : vector<16x64xbf16>, vector<64x128xbf16>, vector<16x128xf32> -> vector<16x128xf32>
    %c0_7 = arith.constant 0 : index
    %c0_8 = arith.constant 0 : index
    %6 = vector.load %arg5[%c0_7, %c0_8] : memref<1x128xf32, #tpu.memory_space<vmem>>, vector<1x128xf32>
    %7 = vector.broadcast %6 : vector<1x128xf32> to vector<16x128xf32>
    %8 = arith.addf %5, %7 : vector<16x128xf32>
    %c0_9 = arith.constant 0 : index
    %c0_10 = arith.constant 0 : index
    %c0_11 = arith.constant 0 : index
    %9 = vector.load %arg2[%c0_9, %c0_10, %c0_11] : memref<1x16x4xi32, #tpu.memory_space<vmem>>, vector<1x16x4xi32>
    %10 = vector.shape_cast %9 : vector<1x16x4xi32> to vector<16x4xi32>
    %11 = vector.extract_strided_slice %10 {offsets = [0, 0], sizes = [16, 1], strides = [1, 1]} : vector<16x4xi32> to vector<16x1xi32>
    %12 = vector.shape_cast %11 : vector<16x1xi32> to vector<16x1xi32>
    %13 = vector.broadcast %12 : vector<16x1xi32> to vector<16x16xi32>
    %14 = tpu.iota {dimensions = array<i32: 1>} : vector<16x16xi32>
    %15 = arith.cmpi eq, %13, %14 : vector<16x16xi32>
    %16 = arith.extui %15 : vector<16x16xi1> to vector<16x16xi32>
    %17 = arith.sitofp %16 : vector<16x16xi32> to vector<16x16xf32>
    %cst_12 = arith.constant dense<0.000000e+00> : vector<16x128xf32>
    %18 = tpu.matmul %17, %3, %cst_12 {dimension_numbers = #tpu.dot_dimension_numbers<[1], [0], [0], [1], [0, 0, 1, 1], [], []>} : vector<16x16xf32>, vector<16x128xf32>, vector<16x128xf32> -> vector<16x128xf32>
    %19 = vector.extract_strided_slice %10 {offsets = [0, 1], sizes = [16, 1], strides = [1, 1]} : vector<16x4xi32> to vector<16x1xi32>
    %20 = vector.shape_cast %19 : vector<16x1xi32> to vector<16x1xi32>
    %21 = vector.broadcast %20 : vector<16x1xi32> to vector<16x16xi32>
    %22 = tpu.iota {dimensions = array<i32: 1>} : vector<16x16xi32>
    %23 = arith.cmpi eq, %21, %22 : vector<16x16xi32>
    %24 = arith.extui %23 : vector<16x16xi1> to vector<16x16xi32>
    %25 = arith.sitofp %24 : vector<16x16xi32> to vector<16x16xf32>
    %cst_13 = arith.constant dense<0.000000e+00> : vector<16x128xf32>
    %26 = tpu.matmul %25, %3, %cst_13 {dimension_numbers = #tpu.dot_dimension_numbers<[1], [0], [0], [1], [0, 0, 1, 1], [], []>} : vector<16x16xf32>, vector<16x128xf32>, vector<16x128xf32> -> vector<16x128xf32>
    %27 = arith.maximumf %18, %26 : vector<16x128xf32>
    %28 = vector.extract_strided_slice %10 {offsets = [0, 2], sizes = [16, 1], strides = [1, 1]} : vector<16x4xi32> to vector<16x1xi32>
    %29 = vector.shape_cast %28 : vector<16x1xi32> to vector<16x1xi32>
    %30 = vector.broadcast %29 : vector<16x1xi32> to vector<16x16xi32>
    %31 = tpu.iota {dimensions = array<i32: 1>} : vector<16x16xi32>
    %32 = arith.cmpi eq, %30, %31 : vector<16x16xi32>
    %33 = arith.extui %32 : vector<16x16xi1> to vector<16x16xi32>
    %34 = arith.sitofp %33 : vector<16x16xi32> to vector<16x16xf32>
    %cst_14 = arith.constant dense<0.000000e+00> : vector<16x128xf32>
    %35 = tpu.matmul %34, %3, %cst_14 {dimension_numbers = #tpu.dot_dimension_numbers<[1], [0], [0], [1], [0, 0, 1, 1], [], []>} : vector<16x16xf32>, vector<16x128xf32>, vector<16x128xf32> -> vector<16x128xf32>
    %36 = arith.maximumf %27, %35 : vector<16x128xf32>
    %37 = vector.extract_strided_slice %10 {offsets = [0, 3], sizes = [16, 1], strides = [1, 1]} : vector<16x4xi32> to vector<16x1xi32>
    %38 = vector.shape_cast %37 : vector<16x1xi32> to vector<16x1xi32>
    %39 = vector.broadcast %38 : vector<16x1xi32> to vector<16x16xi32>
    %40 = tpu.iota {dimensions = array<i32: 1>} : vector<16x16xi32>
    %41 = arith.cmpi eq, %39, %40 : vector<16x16xi32>
    %42 = arith.extui %41 : vector<16x16xi1> to vector<16x16xi32>
    %43 = arith.sitofp %42 : vector<16x16xi32> to vector<16x16xf32>
    %cst_15 = arith.constant dense<0.000000e+00> : vector<16x128xf32>
    %44 = tpu.matmul %43, %3, %cst_15 {dimension_numbers = #tpu.dot_dimension_numbers<[1], [0], [0], [1], [0, 0, 1, 1], [], []>} : vector<16x16xf32>, vector<16x128xf32>, vector<16x128xf32> -> vector<16x128xf32>
    %45 = arith.maximumf %36, %44 : vector<16x128xf32>
    %46 = arith.addf %45, %8 : vector<16x128xf32>
    %cst_16 = arith.constant 0.000000e+00 : f32
    %47 = vector.broadcast %cst_16 : f32 to vector<16x128xf32>
    %48 = arith.cmpf ogt, %46, %47 : vector<16x128xf32>
    %cst_17 = arith.constant 2.000000e-01 : f32
    %49 = vector.broadcast %cst_17 : f32 to vector<16x128xf32>
    %50 = arith.mulf %49, %46 : vector<16x128xf32>
    %51 = arith.select %48, %46, %50 : vector<16x128xi1>, vector<16x128xf32>
    %52 = arith.truncf %51 : vector<16x128xf32> to vector<16x128xbf16>
    %c0_18 = arith.constant 0 : index
    %c0_19 = arith.constant 0 : index
    %c0_20 = arith.constant 0 : index
    %53 = vector.load %arg6[%c0_18, %c0_19, %c0_20] : memref<1x16x128xbf16, #tpu.memory_space<vmem>>, vector<1x16x128xbf16>
    %54 = vector.shape_cast %53 : vector<1x16x128xbf16> to vector<16x128xbf16>
    %55 = vector.shape_cast %52 : vector<16x128xbf16> to vector<1x16x128xbf16>
    tpu.vector_store %arg6[%c0_18, %c0_19, %c0_20], %55 {strides = array<i32>} : memref<1x16x128xbf16, #tpu.memory_space<vmem>>, vector<1x16x128xbf16>,
    return
  }
  func.func @transform_0(%arg0: i32) -> (i32, i32, i32) {
    %c0_i32 = arith.constant 0 : i32
    %c0_i32_0 = arith.constant 0 : i32
    %c0_i32_1 = arith.constant 0 : i32
    return %arg0, %c0_i32, %c0_i32_0 : i32, i32, i32
  }
  func.func @transform_1(%arg0: i32) -> (i32, i32, i32) {
    %c0_i32 = arith.constant 0 : i32
    %c0_i32_0 = arith.constant 0 : i32
    %c0_i32_1 = arith.constant 0 : i32
    return %arg0, %c0_i32, %c0_i32_0 : i32, i32, i32
  }
  func.func @transform_2(%arg0: i32) -> (i32, i32) {
    %c0_i32 = arith.constant 0 : i32
    %c0_i32_0 = arith.constant 0 : i32
    %c0_i32_1 = arith.constant 0 : i32
    return %c0_i32, %c0_i32_0 : i32, i32
  }
  func.func @transform_3(%arg0: i32) -> (i32, i32) {
    %c0_i32 = arith.constant 0 : i32
    %c0_i32_0 = arith.constant 0 : i32
    %c0_i32_1 = arith.constant 0 : i32
    return %c0_i32, %c0_i32_0 : i32, i32
  }
  func.func @transform_4(%arg0: i32) -> (i32, i32) {
    %c0_i32 = arith.constant 0 : i32
    %c0_i32_0 = arith.constant 0 : i32
    %c0_i32_1 = arith.constant 0 : i32
    return %c0_i32, %c0_i32_0 : i32, i32
  }
  func.func @transform_5(%arg0: i32) -> (i32, i32, i32) {
    %c0_i32 = arith.constant 0 : i32
    %c0_i32_0 = arith.constant 0 : i32
    %c0_i32_1 = arith.constant 0 : i32
    return %arg0, %c0_i32, %c0_i32_0 : i32, i32, i32
  }
}

module attributes {stable_mosaic.version = 11 : i64} {
  func.func @_conv5_pool_kernel(%arg0: i32, %arg1: i32, %arg2: memref<1x16x64xbf16, #tpu.memory_space<vmem>>, %arg3: memref<1x16x64xbf16, #tpu.memory_space<vmem>>, %arg4: memref<1x16x128xbf16, #tpu.memory_space<vmem>>, %arg5: memref<1x16x256xbf16, #tpu.memory_space<vmem>>, %arg6: memref<512x128xbf16, #tpu.memory_space<vmem>>, %arg7: memref<1x128xf32, #tpu.memory_space<vmem>>, %arg8: memref<1x1x256xf32, #tpu.memory_space<vmem>>, %arg9: memref<16x512xbf16, #tpu.memory_space<vmem>>, %arg10: memref<1x128xf32, #tpu.memory_space<vmem>>, %arg11: memref<1x128xf32, #tpu.memory_space<vmem>>) attributes {dimension_semantics = [#tpu.dimension_semantics<parallel>, #tpu.dimension_semantics<arbitrary>], iteration_bounds = array<i64: 2, 1>, scalar_prefetch = 0 : i64, scratch_operands = 3 : i64, tpu.core_type = #tpu.core_type<tc>, window_params = [{transform_indices = @transform_0, window_bounds = array<i64: 1, 16, 64>}, {transform_indices = @transform_1, window_bounds = array<i64: 1, 16, 64>}, {transform_indices = @transform_2, window_bounds = array<i64: 1, 16, 128>}, {transform_indices = @transform_3, window_bounds = array<i64: 1, 16, 256>}, {pipeline_mode = #tpu.pipeline_mode<synchronous>, transform_indices = @transform_4, window_bounds = array<i64: 512, 128>}, {pipeline_mode = #tpu.pipeline_mode<synchronous>, transform_indices = @transform_5, window_bounds = array<i64: 1, 128>}, {transform_indices = @transform_6, window_bounds = array<i64: 1, 1, 256>}]} {
    %c0_i32 = arith.constant 0 : i32
    %0 = arith.cmpi eq, %arg1, %c0_i32 : i32
    %1 = arith.extui %0 : i1 to i32
    %c0_i32_0 = arith.constant 0 : i32
    %2 = arith.cmpi ne, %1, %c0_i32_0 : i32
    scf.if %2 {
      %cst_37 = arith.constant 0xFF800000 : f32
      %39 = vector.broadcast %cst_37 : f32 to vector<1x128xf32>
      %c0_38 = arith.constant 0 : index
      %c0_39 = arith.constant 0 : index
      %40 = vector.load %arg10[%c0_38, %c0_39] : memref<1x128xf32, #tpu.memory_space<vmem>>, vector<1x128xf32>
      tpu.vector_store %arg10[%c0_38, %c0_39], %39 {strides = array<i32>} : memref<1x128xf32, #tpu.memory_space<vmem>>, vector<1x128xf32>,
      %cst_40 = arith.constant 0.000000e+00 : f32
      %41 = vector.broadcast %cst_40 : f32 to vector<1x128xf32>
      %c0_41 = arith.constant 0 : index
      %c0_42 = arith.constant 0 : index
      %42 = vector.load %arg11[%c0_41, %c0_42] : memref<1x128xf32, #tpu.memory_space<vmem>>, vector<1x128xf32>
      tpu.vector_store %arg11[%c0_41, %c0_42], %41 {strides = array<i32>} : memref<1x128xf32, #tpu.memory_space<vmem>>, vector<1x128xf32>,
    } else {
    }
    %c0 = arith.constant 0 : index
    %c0_1 = arith.constant 0 : index
    %c0_2 = arith.constant 0 : index
    %3 = vector.load %arg2[%c0, %c0_1, %c0_2] : memref<1x16x64xbf16, #tpu.memory_space<vmem>>, vector<1x16x64xbf16>
    %4 = vector.shape_cast %3 : vector<1x16x64xbf16> to vector<16x64xbf16>
    %c0_3 = arith.constant 0 : index
    %c0_4 = arith.constant 0 : index
    %5 = vector.load %arg9[%c0_3, %c0_4] : memref<16x512xbf16, #tpu.memory_space<vmem>>, vector<16x64xbf16>
    tpu.vector_store %arg9[%c0_3, %c0_4], %4 {strides = array<i32>} : memref<16x512xbf16, #tpu.memory_space<vmem>>, vector<16x64xbf16>,
    %c0_5 = arith.constant 0 : index
    %c0_6 = arith.constant 0 : index
    %c0_7 = arith.constant 0 : index
    %6 = vector.load %arg3[%c0_5, %c0_6, %c0_7] : memref<1x16x64xbf16, #tpu.memory_space<vmem>>, vector<1x16x64xbf16>
    %7 = vector.shape_cast %6 : vector<1x16x64xbf16> to vector<16x64xbf16>
    %c0_8 = arith.constant 0 : index
    %c64 = arith.constant 64 : index
    %8 = vector.load %arg9[%c0_8, %c64] : memref<16x512xbf16, #tpu.memory_space<vmem>>, vector<16x64xbf16>
    tpu.vector_store %arg9[%c0_8, %c64], %7 {strides = array<i32>} : memref<16x512xbf16, #tpu.memory_space<vmem>>, vector<16x64xbf16>,
    %c0_9 = arith.constant 0 : index
    %c0_10 = arith.constant 0 : index
    %c0_11 = arith.constant 0 : index
    %9 = vector.load %arg4[%c0_9, %c0_10, %c0_11] : memref<1x16x128xbf16, #tpu.memory_space<vmem>>, vector<1x16x128xbf16>
    %10 = vector.shape_cast %9 : vector<1x16x128xbf16> to vector<16x128xbf16>
    %c0_12 = arith.constant 0 : index
    %c128 = arith.constant 128 : index
    %11 = vector.load %arg9[%c0_12, %c128] : memref<16x512xbf16, #tpu.memory_space<vmem>>, vector<16x128xbf16>
    tpu.vector_store %arg9[%c0_12, %c128], %10 {strides = array<i32>} : memref<16x512xbf16, #tpu.memory_space<vmem>>, vector<16x128xbf16>,
    %c0_13 = arith.constant 0 : index
    %c0_14 = arith.constant 0 : index
    %c0_15 = arith.constant 0 : index
    %12 = vector.load %arg5[%c0_13, %c0_14, %c0_15] : memref<1x16x256xbf16, #tpu.memory_space<vmem>>, vector<1x16x256xbf16>
    %13 = vector.shape_cast %12 : vector<1x16x256xbf16> to vector<16x256xbf16>
    %c0_16 = arith.constant 0 : index
    %c256 = arith.constant 256 : index
    %14 = vector.load %arg9[%c0_16, %c256] : memref<16x512xbf16, #tpu.memory_space<vmem>>, vector<16x256xbf16>
    tpu.vector_store %arg9[%c0_16, %c256], %13 {strides = array<i32>} : memref<16x512xbf16, #tpu.memory_space<vmem>>, vector<16x256xbf16>,
    %c0_17 = arith.constant 0 : index
    %c0_18 = arith.constant 0 : index
    %15 = vector.load %arg9[%c0_17, %c0_18] : memref<16x512xbf16, #tpu.memory_space<vmem>>, vector<16x512xbf16>
    %c0_19 = arith.constant 0 : index
    %c0_20 = arith.constant 0 : index
    %16 = vector.load %arg6[%c0_19, %c0_20] : memref<512x128xbf16, #tpu.memory_space<vmem>>, vector<512x128xbf16>
    %cst = arith.constant dense<0.000000e+00> : vector<16x128xf32>
    %17 = tpu.matmul %15, %16, %cst {dimension_numbers = #tpu.dot_dimension_numbers<[1], [0], [0], [1], [0, 0, 1, 1], [], []>} : vector<16x512xbf16>, vector<512x128xbf16>, vector<16x128xf32> -> vector<16x128xf32>
    %c0_21 = arith.constant 0 : index
    %c0_22 = arith.constant 0 : index
    %18 = vector.load %arg7[%c0_21, %c0_22] : memref<1x128xf32, #tpu.memory_space<vmem>>, vector<1x128xf32>
    %19 = vector.broadcast %18 : vector<1x128xf32> to vector<16x128xf32>
    %20 = arith.addf %17, %19 : vector<16x128xf32>
    %cst_23 = arith.constant 0.000000e+00 : f32
    %21 = vector.broadcast %cst_23 : f32 to vector<16x128xf32>
    %22 = arith.cmpf ogt, %20, %21 : vector<16x128xf32>
    %cst_24 = arith.constant 2.000000e-01 : f32
    %23 = vector.broadcast %cst_24 : f32 to vector<16x128xf32>
    %24 = arith.mulf %23, %20 : vector<16x128xf32>
    %25 = arith.select %22, %20, %24 : vector<16x128xi1>, vector<16x128xf32>
    %c0_25 = arith.constant 0 : index
    %c0_26 = arith.constant 0 : index
    %26 = vector.load %arg10[%c0_25, %c0_26] : memref<1x128xf32, #tpu.memory_space<vmem>>, vector<1x128xf32>
    %cst_27 = arith.constant dense<0xFF800000> : vector<128xf32>
    %27 = vector.multi_reduction <maximumf>, %25, %cst_27 [0] : vector<16x128xf32> to vector<128xf32>
    %28 = vector.shape_cast %27 : vector<128xf32> to vector<1x128xf32>
    %29 = arith.maximumf %26, %28 : vector<1x128xf32>
    %c0_28 = arith.constant 0 : index
    %c0_29 = arith.constant 0 : index
    %30 = vector.load %arg10[%c0_28, %c0_29] : memref<1x128xf32, #tpu.memory_space<vmem>>, vector<1x128xf32>
    tpu.vector_store %arg10[%c0_28, %c0_29], %29 {strides = array<i32>} : memref<1x128xf32, #tpu.memory_space<vmem>>, vector<1x128xf32>,
    %c0_30 = arith.constant 0 : index
    %c0_31 = arith.constant 0 : index
    %31 = vector.load %arg11[%c0_30, %c0_31] : memref<1x128xf32, #tpu.memory_space<vmem>>, vector<1x128xf32>
    %cst_32 = arith.constant dense<0.000000e+00> : vector<128xf32>
    %32 = vector.multi_reduction <add>, %25, %cst_32 [0] : vector<16x128xf32> to vector<128xf32>
    %33 = vector.shape_cast %32 : vector<128xf32> to vector<1x128xf32>
    %34 = arith.addf %31, %33 : vector<1x128xf32>
    %c0_33 = arith.constant 0 : index
    %c0_34 = arith.constant 0 : index
    %35 = vector.load %arg11[%c0_33, %c0_34] : memref<1x128xf32, #tpu.memory_space<vmem>>, vector<1x128xf32>
    tpu.vector_store %arg11[%c0_33, %c0_34], %34 {strides = array<i32>} : memref<1x128xf32, #tpu.memory_space<vmem>>, vector<1x128xf32>,
    %c0_i32_35 = arith.constant 0 : i32
    %36 = arith.cmpi eq, %arg1, %c0_i32_35 : i32
    %37 = arith.extui %36 : i1 to i32
    %c0_i32_36 = arith.constant 0 : i32
    %38 = arith.cmpi ne, %37, %c0_i32_36 : i32
    scf.if %38 {
      %c0_37 = arith.constant 0 : index
      %c0_38 = arith.constant 0 : index
      %39 = vector.load %arg11[%c0_37, %c0_38] : memref<1x128xf32, #tpu.memory_space<vmem>>, vector<1x128xf32>
      %cst_39 = arith.constant 1.600000e+01 : f32
      %40 = vector.broadcast %cst_39 : f32 to vector<1x128xf32>
      %41 = arith.divf %39, %40 : vector<1x128xf32>
      %c0_40 = arith.constant 0 : index
      %c0_41 = arith.constant 0 : index
      %42 = vector.load %arg10[%c0_40, %c0_41] : memref<1x128xf32, #tpu.memory_space<vmem>>, vector<1x128xf32>
      %43 = tpu.concatenate %42, %41 in 1 : vector<1x128xf32>, vector<1x128xf32> -> vector<1x256xf32>
      %c0_42 = arith.constant 0 : index
      %c0_43 = arith.constant 0 : index
      %c0_44 = arith.constant 0 : index
      %44 = vector.load %arg8[%c0_42, %c0_43, %c0_44] : memref<1x1x256xf32, #tpu.memory_space<vmem>>, vector<1x1x256xf32>
      %45 = vector.shape_cast %44 : vector<1x1x256xf32> to vector<1x256xf32>
      %46 = vector.shape_cast %43 : vector<1x256xf32> to vector<1x1x256xf32>
      tpu.vector_store %arg8[%c0_42, %c0_43, %c0_44], %46 {strides = array<i32>} : memref<1x1x256xf32, #tpu.memory_space<vmem>>, vector<1x1x256xf32>,
    } else {
    }
    return
  }
  func.func @transform_0(%arg0: i32, %arg1: i32) -> (i32, i32, i32) {
    %c0_i32 = arith.constant 0 : i32
    %c0_i32_0 = arith.constant 0 : i32
    return %arg0, %arg1, %c0_i32 : i32, i32, i32
  }
  func.func @transform_1(%arg0: i32, %arg1: i32) -> (i32, i32, i32) {
    %c0_i32 = arith.constant 0 : i32
    %c0_i32_0 = arith.constant 0 : i32
    return %arg0, %arg1, %c0_i32 : i32, i32, i32
  }
  func.func @transform_2(%arg0: i32, %arg1: i32) -> (i32, i32, i32) {
    %c0_i32 = arith.constant 0 : i32
    %c0_i32_0 = arith.constant 0 : i32
    return %arg0, %arg1, %c0_i32 : i32, i32, i32
  }
  func.func @transform_3(%arg0: i32, %arg1: i32) -> (i32, i32, i32) {
    %c0_i32 = arith.constant 0 : i32
    %c0_i32_0 = arith.constant 0 : i32
    return %arg0, %arg1, %c0_i32 : i32, i32, i32
  }
  func.func @transform_4(%arg0: i32, %arg1: i32) -> (i32, i32) {
    %c0_i32 = arith.constant 0 : i32
    %c0_i32_0 = arith.constant 0 : i32
    %c0_i32_1 = arith.constant 0 : i32
    return %c0_i32, %c0_i32_0 : i32, i32
  }
  func.func @transform_5(%arg0: i32, %arg1: i32) -> (i32, i32) {
    %c0_i32 = arith.constant 0 : i32
    %c0_i32_0 = arith.constant 0 : i32
    %c0_i32_1 = arith.constant 0 : i32
    return %c0_i32, %c0_i32_0 : i32, i32
  }
  func.func @transform_6(%arg0: i32, %arg1: i32) -> (i32, i32, i32) {
    %c0_i32 = arith.constant 0 : i32
    %c0_i32_0 = arith.constant 0 : i32
    %c0_i32_1 = arith.constant 0 : i32
    return %arg0, %c0_i32, %c0_i32_0 : i32, i32, i32
  }
}

</mosaic_0001>

<bundles_post_ra>
// kernel: _lambda_.5
= control target key start
LH: loop header
LB: loop body
LE: loop exit
PB: predicated region body
PF: predicated region fallthrough
CT: control target
= control target key end

     0   :  { %s661_s18 = smov 0   ;;  %s710_s0 = inlined_call_operand.vmem [shape: bf16[2,16,8], index: 0, kind: input, shape index: {}]   ;;  %s711_s1 = inlined_call_operand.vmem [shape: s32[2,16,4], index: 1, kind: input, shape index: {}]   ;;  %s712_s2 = inlined_call_operand.vmem [shape: bf16[8,64], index: 2, kind: input, shape index: {}]   ;;  %s713_s3 = inlined_call_operand.vmem [shape: bf16[8,64], index: 3, kind: input, shape index: {}]   ;;  %s714_s4 = inlined_call_operand.vmem [shape: f32[1,64], index: 4, kind: input, shape index: {}]   ;;  %s715_s5 = inlined_call_operand.vmem [shape: bf16[2,16,64], index: 5, kind: output, shape index: {}]  }
   0x1 LB: > { %s553_s19 = sadd.s32 4294967295, %s624_s18   ;;  %p557_p0 = scmp.ge.s32.totalorder %s624_s18, 1  ;;  %s624_s18 = sphi %s661_s18, %s15_s18  }
   0x2   : > { %p197_p1 = scmp.lt.s32.totalorder %s624_s18, 3 }
   0x4   : > { %p198_p2 = pnand %p557_p0, %p197_p1 }
   0x5   : > { %p230_p3 = scmp.lt.s32.totalorder (!%p198_p2), %s553_s19, 1 }
   0x6   : > { %201 = sbr.rel (%p198_p2) target bundleno = 314 (0x13a), region = 40 }
   0xb   : > { %v248_v0 = vld [vmem:[%s712_s2] sm:$0xf]  ;;  %vm258_vm0 = vcmask 1043456   ;;  %v626_v2 = vmov 0   ;;  %s717_s19 = smov (!%p230_p3, %s553_s19), 1  ;;  %v627_v3 = vmov 2   ;;  %v306_v17 = vlaneseq }
   0xc   : > { %v260_v1 = vsel %vm258_vm0, %v248_v0, 0  ;;  %611 = vset.pattern.permute.xlu1 %v626_v2  ;;  %609 = vset.pattern.permute.xlu0 %v626_v2  ;;  %s588_s22 = sshll.u32 %s717_s19, 3  ;;  %s589_s23 = sshll.u32 %s717_s19, 4  ;;  %vm254_vm1 = vcmask 64512   ;;  %v628_v7 = vmov 1   ;;  %v629_v8 = vmov 3  }
   0xd   : > { %269 = vmatpush.bf16.msra.mxu0 %v260_v1  ;;  %613 = vset.pattern.permute.xlu2 %v627_v3  ;;  %s234_s26 = scalar_lea.vmem %s710_s0, %s588_s22  ;;  %s239_s29 = scalar_lea.vmem %s711_s1, %s589_s23  ;;  %v276_v9 = vld [vmem:[%s713_s3] sm:$0xf]  ;;  %v307_v19 = vand.u32 127, %v306_v17  ;;  %v630_v23 = vmov 0.0   ;;  %vm314_vm6 = vcmask 130048   ;;  %vm483_vm12 = vcmask 519168  }
   0xe   : > { %v591_v4 = vld [vmem:[%s234_s26] sm:$0xff]  ;;  %v299_v5 = vld [vmem:[%s239_s29 + $0x8] sm:$0xff]  ;;  %v282_v10 = vsel %vm258_vm0, %v276_v9, 0  ;;  %s244_s11 = scalar_lea.vmem %s715_s5, %s588_s22 }
   0xf   : > { %v298_v6 = vld [vmem:[%s239_s29] sm:$0xff]  ;;  %304 = vperm.xlu1 %611, %v299_v5   ;;  %391 = vperm.xlu2 %613, %v299_v5  }
  0x10   : > { %568 = vmatmul.msk.bf16.vlgmr.msra.gmra.mxu0 %vm254_vm1, %v591_v4  ;;  %301 = vperm.xlu0 %609, %v298_v6   ;;  %v617_v37 = vld [vmem:[%s714_s4] ss:$0 sm:$0xff] }
  0x11   : > { %291 = vmatpush.bf16.msra.mxu1 %v282_v10 }
  0x14   : > { %569 = vmatmul.msk.bf16.vlgmr.msra.gmra.mxu1 %vm254_vm1, %v591_v4 }
  0x17   : > { %612 = vset.pattern.permute.xlu1 %v628_v7  ;;  %614 = vset.pattern.permute.xlu2 %v629_v8 }
  0x18   : > { %348 = vperm.xlu1 %612, %v299_v5   ;;  %610 = vset.pattern.permute.xlu0 %v628_v7 }
  0x19   : > { %345 = vperm.xlu0 %610, %v298_v6   ;;  %434 = vperm.xlu2 %614, %v299_v5  }
  0x20   : > { %615 = vset.pattern.permute.xlu1 %v627_v3 }
  0x21   : > { %388 = vperm.xlu1 %615, %v298_v6   ;;  %616 = vset.pattern.permute.xlu0 %v629_v8 }
  0x22   : > { %431 = vperm.xlu2 %614, %v298_v6  }
  0x69   : > { %v392_v11 = vpop.permute.xlu2 %391 }
  0x6a   : > { %vm394_vm10 = vcmp.eq.s32.totalorder %v392_v11, %v307_v19 }
  0x6b   : > { %v579_v31 = vsel %vm394_vm10, 1.0, %v630_v23 }
  0x73   : > { %v435_v14 = vpop.permute.xlu2 %434 }
  0x74   : > { %vm437_vm9 = vcmp.eq.s32.totalorder %v435_v14, %v307_v19 }
  0x75   : > { %v583_v30 = vsel %vm437_vm9, 1.0, %v630_v23 }
  0x7c   : > { %v432_v20 = vpop.permute.xlu2 %431 }
  0x7d   : > { %vm436_vm5 = vcmp.eq.s32.totalorder %v432_v20, %v307_v19 }
  0x7e   : > { %v582_v27 = vsel %vm436_vm5, 1.0, %v630_v23 }
  0x81   : > { %v305_v12 = vpop.permute.xlu1 %304 }
  0x82   : > { %v302_v13 = vpop.permute.xlu0 %301  ;;  %vm309_vm8 = vcmp.eq.s32.totalorder %v305_v12, %v307_v19 }
  0x83   : > { %vm308_vm3 = vcmp.eq.s32.totalorder %v302_v13, %v307_v19  ;;  %v571_v29 = vsel %vm309_vm8, 1.0, %v630_v23 }
  0x84   : > { %v570_v25 = vsel %vm308_vm3, 1.0, %v630_v23 }
  0x8a   : > { %v349_v15 = vpop.permute.xlu1 %348 }
  0x8b   : > { %v346_v18 = vpop.permute.xlu0 %345  ;;  %vm351_vm7 = vcmp.eq.s32.totalorder %v349_v15, %v307_v19 }
  0x8c   : > { %vm350_vm2 = vcmp.eq.s32.totalorder %v346_v18, %v307_v19  ;;  %v575_v28 = vsel %vm351_vm7, 1.0, %v630_v23 }
  0x8d   : > { %v271_v16 = vpop.f32.mrf.mxu0  ;;  %v574_v24 = vsel %vm350_vm2, 1.0, %v630_v23 }
  0x91   : > { %v293_v32 = vpop.f32.mrf.mxu1 }
  0x92   : > { %v294_v41 = vadd.f32 %v617_v37, %v293_v32 }
  0x93   : > { %v389_v21 = vpop.permute.xlu1 %388 }
  0x94   : > { %vm393_vm4 = vcmp.eq.s32.totalorder %v389_v21, %v307_v19 }
  0x95   : > { %v273_v22 = vpop.f32.mrf.mxu0  ;;  %v578_v26 = vsel %vm393_vm4, 1.0, %v630_v23 }
  0x96   : > { %335 = vmatpush.msra.mxu2 %v273_v22  ;;  %376 = vmatpush.msra.mxu3 %v273_v22 }
  0x97   : > { %419 = vmatpush.msrb.mxu0 %v273_v22  ;;  %462 = vmatpush.msrb.mxu1 %v273_v22 }
  0x98   : > { %336 = vmatpush.msra.mxu2 %v271_v16  ;;  %377 = vmatpush.msra.mxu3 %v271_v16 }
  0x99   : > { %420 = vmatpush.msrb.mxu0 %v271_v16  ;;  %463 = vmatpush.msrb.mxu1 %v271_v16  ;;  %v295_v33 = vpop.f32.mrf.mxu1 }
  0x9a   : > { %572 = vmatmul.msk.f32.vlgmr.msra.gmra.mxu2 %vm314_vm6, %v570_v25  ;;  %576 = vmatmul.msk.f32.vlgmr.msra.gmra.mxu3 %vm314_vm6, %v574_v24  ;;  %v296_v53 = vadd.f32 %v617_v37, %v295_v33 }
  0x9b   : > { %592 = vmatpush.msrb.mxu2 %v273_v22  ;;  %594 = vmatpush.msrb.mxu3 %v273_v22 }
  0x9c   : > { %580 = vmatmul.msk.f32.vlgmr.msrb.gmra.mxu0 %vm314_vm6, %v578_v26  ;;  %584 = vmatmul.msk.f32.vlgmr.msrb.gmra.mxu1 %vm314_vm6, %v582_v27 }
  0x9d   : > { %593 = vmatpush.msrb.mxu2 %v271_v16  ;;  %595 = vmatpush.msrb.mxu3 %v271_v16 }
  0xa2   : > { %573 = vmatmul.msk.f32.gmra.mxu2 %vm314_vm6, %v571_v29  ;;  %577 = vmatmul.msk.f32.gmra.mxu3 %vm314_vm6, %v575_v28 }
  0xaa   : > { %581 = vmatmul.msk.f32.vlgmr.msrb.gmra.mxu2 %vm314_vm6, %v579_v31  ;;  %585 = vmatmul.msk.f32.vlgmr.msrb.gmra.mxu3 %vm314_vm6, %v583_v30 }
 0x119   : > { %v422_v34 = vpop.f32.mrf.mxu0  ;;  %v465_v39 = vpop.f32.mrf.mxu1 }
 0x11d   : > { %v338_v35 = vpop.f32.mrf.mxu2  ;;  %v379_v36 = vpop.f32.mrf.mxu3 }
 0x11e   : > { %v385_v38 = vmax.f32 %v338_v35, %v379_v36 }
 0x120   : > { %v428_v40 = vmax.f32 %v385_v38, %v422_v34 }
 0x122   : > { %v471_v42 = vmax.f32 %v428_v40, %v465_v39 }
 0x124   : > { %v473_v43 = vadd.f32 %v471_v42, %v294_v41 }
 0x125   : > { %v341_v44 = vpop.f32.mrf.mxu2  ;;  %v382_v45 = vpop.f32.mrf.mxu3 }
 0x126   : > { %vm475_vm11 = vcmp.gt.f32.partialorder %v473_v43, 0.0  ;;  %v477_v46 = vmul.f32 0.2, %v473_v43  ;;  %v386_v49 = vmax.f32 %v341_v44, %v382_v45 }
 0x128   : > { %v479_v47 = vsel %vm475_vm11, %v473_v43, %v477_v46 }
 0x129   : > { %v481_v48 = vpack.c.bf16 %v479_v47, %v479_v47 }
 0x12b   : > { %484 = vst.msk [vmem:[%s244_s11] sm:$0xf] %vm483_vm12, %v481_v48 }
 0x12d   : > { %v425_v50 = vpop.f32.mrf.mxu2  ;;  %v468_v52 = vpop.f32.mrf.mxu3 }
 0x12e   : > { %v429_v51 = vmax.f32 %v386_v49, %v425_v50 }
 0x130   : > { %v472_v54 = vmax.f32 %v429_v51, %v468_v52 }
 0x132   : > { %v474_v55 = vadd.f32 %v472_v54, %v296_v53 }
 0x134   : > { %vm476_vm13 = vcmp.gt.f32.partialorder %v474_v55, 0.0  ;;  %v478_v56 = vmul.f32 0.2, %v474_v55 }
 0x136   : > { %v480_v57 = vsel %vm476_vm13, %v474_v55, %v478_v56 }
 0x137   : > { %v482_v58 = vpack.c.bf16 %v480_v57, %v480_v57 }
 0x139   : > { %485 = vst.msk [vmem:[%s244_s11 + $0x4] sm:$0xf] %vm483_vm12, %v482_v58 }
 0x13a PF: > { %s15_s18 = sadd.s32 1, %s624_s18  }
 0x13b   : > { %p12_p4 = scmp.ge.s32.totalorder %s15_s18, 4  }
 0x13d   :  { %14 = sbr.rel (!%p12_p4) target bundleno = 1 (0x1), region = 73 }

// kernel: _lambda_.8
= control target key start
LH: loop header
LB: loop body
LE: loop exit
PB: predicated region body
PF: predicated region fallthrough
CT: control target
= control target key end

     0   :  { %s1136_s18 = smov 0   ;;  %s1388_s0 = inlined_call_operand.vmem [shape: bf16[2,16,128], index: 0, kind: input, shape index: {}]   ;;  %s1389_s1 = inlined_call_operand.vmem [shape: s32[2,16,4], index: 1, kind: input, shape index: {}]   ;;  %s1390_s2 = inlined_call_operand.vmem [shape: bf16[128,256], index: 2, kind: input, shape index: {}]   ;;  %s1391_s3 = inlined_call_operand.vmem [shape: bf16[128,256], index: 3, kind: input, shape index: {}]   ;;  %s1392_s4 = inlined_call_operand.vmem [shape: f32[1,256], index: 4, kind: input, shape index: {}]   ;;  %s1393_s5 = inlined_call_operand.vmem [shape: bf16[2,16,256], index: 5, kind: output, shape index: {}]  }
   0x1 LB: > { %s867_s19 = sadd.s32 4294967295, %s1099_s18   ;;  %p871_p0 = scmp.ge.s32.totalorder %s1099_s18, 1  ;;  %s1099_s18 = sphi %s1136_s18, %s15_s18  }
   0x2   : > { %p197_p1 = scmp.lt.s32.totalorder %s1099_s18, 3 }
   0x4   : > { %p198_p2 = pnand %p871_p0, %p197_p1 }
   0x5   : > { %p230_p3 = scmp.lt.s32.totalorder (!%p198_p2), %s867_s19, 1 }
   0x6   : > { %201 = sbr.rel (%p198_p2) target bundleno = 350 (0x15e), region = 40 }
   0xb   : > { %v940_v0 = vld [vmem:[%s1390_s2 + $0x70] sm:$0xf]  ;;  %v1055_v1 = vld [vmem:[%s1390_s2 + $0x74] sm:$0xf0]  ;;  %v1054_v2 = vld [vmem:[%s1390_s2 + $0x74] sm:$0xf] }
   0xc   : > { %v941_v3 = vor.u32 %v1055_v1, %v940_v0  ;;  %v942_v4 = vld [vmem:[%s1390_s2 + $0x78] sm:$0xf0]  ;;  %v932_v5 = vld [vmem:[%s1390_s2 + $0x60] sm:$0xf]  ;;  %v1053_v6 = vld [vmem:[%s1390_s2 + $0x64] sm:$0xf0] }
   0xd   : > { %v945_v7 = vor.u32 %v1054_v2, %v942_v4  ;;  %v1052_v8 = vld [vmem:[%s1390_s2 + $0x64] sm:$0xf]  ;;  %v934_v9 = vld [vmem:[%s1390_s2 + $0x68] sm:$0xf0]  ;;  %v933_v10 = vor.u32 %v1053_v6, %v932_v5  ;;  %v924_v12 = vld [vmem:[%s1390_s2 + $0x50] sm:$0xf] }
   0xe   : > { %349 = vmatpush.bf16.msra.mxu0 %v941_v3  ;;  %v937_v11 = vor.u32 %v1052_v8, %v934_v9  ;;  %v1051_v13 = vld [vmem:[%s1390_s2 + $0x54] sm:$0xf0]  ;;  %v1050_v14 = vld [vmem:[%s1390_s2 + $0x54] sm:$0xf]  ;;  %v926_v15 = vld [vmem:[%s1390_s2 + $0x58] sm:$0xf0] }
   0xf   : > { %363 = vmatpush.bf16.msra.mxu1 %v945_v7  ;;  %v925_v16 = vor.u32 %v1051_v13, %v924_v12  ;;  %v929_v17 = vor.u32 %v1050_v14, %v926_v15  ;;  %v916_v18 = vld [vmem:[%s1390_s2 + $0x40] sm:$0xf]  ;;  %v1049_v19 = vld [vmem:[%s1390_s2 + $0x44] sm:$0xf0]  ;;  %v1048_v20 = vld [vmem:[%s1390_s2 + $0x44] sm:$0xf] }
  0x10   : > { %v918_v21 = vld [vmem:[%s1390_s2 + $0x48] sm:$0xf0]  ;;  %v908_v22 = vld [vmem:[%s1390_s2 + $0x30] sm:$0xf]  ;;  %v1047_v23 = vld [vmem:[%s1390_s2 + $0x34] sm:$0xf0]  ;;  %v917_v24 = vor.u32 %v1049_v19, %v916_v18 }
  0x11   : > { %v1046_v25 = vld [vmem:[%s1390_s2 + $0x34] sm:$0xf]  ;;  %v910_v26 = vld [vmem:[%s1390_s2 + $0x38] sm:$0xf0]  ;;  %v1101_v27 = vmov 1   ;;  %v921_v29 = vor.u32 %v1048_v20, %v918_v21  ;;  %s1395_s19 = smov (!%p230_p3, %s867_s19), 1  ;;  %v909_v41 = vor.u32 %v1047_v23, %v908_v22 }
  0x12   : > { %350 = vmatpush.bf16.msra.mxu0 %v933_v10  ;;  %1085 = vset.pattern.permute.xlu0 %v1101_v27  ;;  %v1004_v28 = vld [vmem:[%s1391_s3 + $0x70] sm:$0xf]  ;;  %v1071_v30 = vld [vmem:[%s1391_s3 + $0x74] sm:$0xf0]  ;;  %v1070_v31 = vld [vmem:[%s1391_s3 + $0x74] sm:$0xf]  ;;  %v913_v46 = vor.u32 %v1046_v25, %v910_v26 }
  0x13   : > { %364 = vmatpush.bf16.msra.mxu1 %v937_v11  ;;  %1087 = vset.pattern.permute.xlu1 %v1101_v27  ;;  %v1102_v32 = vmov 3   ;;  %v1005_v33 = vor.u32 %v1071_v30, %v1004_v28  ;;  %v1006_v34 = vld [vmem:[%s1391_s3 + $0x78] sm:$0xf0]  ;;  %v996_v35 = vld [vmem:[%s1391_s3 + $0x60] sm:$0xf]  ;;  %s1037_s28 = sshll.u32 %s1395_s19, 4 }
  0x14   : > { %1089 = vset.pattern.permute.xlu2 %v1102_v32  ;;  %v1069_v36 = vld [vmem:[%s1391_s3 + $0x64] sm:$0xf0]  ;;  %v900_v37 = vld [vmem:[%s1390_s2 + $0x20] sm:$0xf]  ;;  %v1009_v38 = vor.u32 %v1070_v31, %v1006_v34  ;;  %v1068_v39 = vld [vmem:[%s1391_s3 + $0x64] sm:$0xf]  ;;  %s239_s14 = scalar_lea.vmem %s1389_s1, %s1037_s28  ;;  %s244_s25 = scalar_lea.vmem %s1393_s5, %s1037_s28 }
  0x15   : > { %v998_v40 = vld [vmem:[%s1391_s3 + $0x68] sm:$0xf0]  ;;  %v1045_v42 = vld [vmem:[%s1390_s2 + $0x24] sm:$0xf0]  ;;  %v1044_v43 = vld [vmem:[%s1390_s2 + $0x24] sm:$0xf]  ;;  %479 = vmatpush.bf16.msra.mxu2 %v1005_v33  ;;  %v997_v44 = vor.u32 %v1069_v36, %v996_v35 }
  0x16   : > { %351 = vmatpush.bf16.msra.mxu0 %v925_v16  ;;  %v988_v45 = vld [vmem:[%s1391_s3 + $0x50] sm:$0xf]  ;;  %v507_v47 = vld [vmem:[%s239_s14] sm:$0xff]  ;;  %v1253_v48 = vld [vmem:[%s239_s14 + $0x8] sm:$0xff]  ;;  %493 = vmatpush.bf16.msra.mxu3 %v1009_v38  ;;  %v1001_v49 = vor.u32 %v1068_v39, %v998_v40  ;;  %v901_v54 = vor.u32 %v1045_v42, %v900_v37  ;;  %s1036_s21 = sshll.u32 %s1395_s19, 3  ;;  %v1103_v8 = vmov 0   ;;  %v515_v42 = vlaneseq }
  0x17   : > { %365 = vmatpush.bf16.msra.mxu1 %v929_v17  ;;  %v1067_v50 = vld [vmem:[%s1391_s3 + $0x54] sm:$0xf0]  ;;  %v902_v51 = vld [vmem:[%s1390_s2 + $0x28] sm:$0xf0]  ;;  %577 = vperm.xlu0 %1085, %v507_v47   ;;  %v1066_v52 = vld [vmem:[%s1391_s3 + $0x54] sm:$0xf]  ;;  %s234_s10 = scalar_lea.vmem %s1388_s0, %s1036_s21 }
  0x18   : > { %580 = vperm.xlu1 %1087, %v1253_v48   ;;  %v990_v53 = vld [vmem:[%s1391_s3 + $0x58] sm:$0xf0]  ;;  %713 = vperm.xlu2 %1089, %v507_v47   ;;  %v989_v55 = vor.u32 %v1067_v50, %v988_v45  ;;  %v905_v56 = vor.u32 %v1044_v43, %v902_v51  ;;  %v892_v57 = vld [vmem:[%s1390_s2 + $0x10] sm:$0xf]  ;;  %v1043_v58 = vld [vmem:[%s1390_s2 + $0x14] sm:$0xf0] }
  0x19   : > { %480 = vmatpush.bf16.msra.mxu2 %v997_v44  ;;  %v1042_v59 = vld [vmem:[%s1390_s2 + $0x14] sm:$0xf]  ;;  %v993_v60 = vor.u32 %v1066_v52, %v990_v53  ;;  %v894_v61 = vld [vmem:[%s1390_s2 + $0x18] sm:$0xf0]  ;;  %v980_v62 = vld [vmem:[%s1391_s3 + $0x40] sm:$0xf]  ;;  %v893_v2 = vor.u32 %v1043_v58, %v892_v57 }
  0x1a   : > { %352 = vmatpush.bf16.msra.mxu0 %v917_v24  ;;  %494 = vmatpush.bf16.msra.mxu3 %v1001_v49  ;;  %v1065_v63 = vld [vmem:[%s1391_s3 + $0x44] sm:$0xf0]  ;;  %v1064_v0 = vld [vmem:[%s1391_s3 + $0x44] sm:$0xf]  ;;  %v982_v1 = vld [vmem:[%s1391_s3 + $0x48] sm:$0xf0]  ;;  %v897_v3 = vor.u32 %v1042_v59, %v894_v61 }
  0x1b   : > { %366 = vmatpush.bf16.msra.mxu1 %v921_v29  ;;  %v884_v4 = vld [vmem:[%s1390_s2] sm:$0xf]  ;;  %v1041_v5 = vld [vmem:[%s1390_s2 + $0x4] sm:$0xf0]  ;;  %v1040_v6 = vld [vmem:[%s1390_s2 + $0x4] sm:$0xf]  ;;  %v981_v9 = vor.u32 %v1065_v63, %v980_v62  ;;  %v985_v10 = vor.u32 %v1064_v0, %v982_v1 }
  0x1c   : > { %v886_v7 = vld [vmem:[%s1390_s2 + $0x8] sm:$0xf0]  ;;  %v972_v11 = vld [vmem:[%s1391_s3 + $0x30] sm:$0xf]  ;;  %v1063_v12 = vld [vmem:[%s1391_s3 + $0x34] sm:$0xf0]  ;;  %v885_v15 = vor.u32 %v1041_v5, %v884_v4 }
  0x1d   : > { %481 = vmatpush.bf16.msra.mxu2 %v989_v55  ;;  %v1062_v13 = vld [vmem:[%s1391_s3 + $0x34] sm:$0xf]  ;;  %v974_v14 = vld [vmem:[%s1391_s3 + $0x38] sm:$0xf0]  ;;  %v1104_v16 = vmov 2   ;;  %v889_v17 = vor.u32 %v1040_v6, %v886_v7  ;;  %v1039_v18 = vld [vmem:[%s234_s10] sm:$0xff]  ;;  %v973_v19 = vor.u32 %v1063_v12, %v972_v11 }
  0x1e   : > { %353 = vmatpush.bf16.msra.mxu0 %v909_v41  ;;  %495 = vmatpush.bf16.msra.mxu3 %v993_v60  ;;  %v977_v20 = vor.u32 %v1062_v13, %v974_v14  ;;  %v964_v21 = vld [vmem:[%s1391_s3 + $0x20] sm:$0xf]  ;;  %v1061_v22 = vld [vmem:[%s1391_s3 + $0x24] sm:$0xf0]  ;;  %v1060_v23 = vld [vmem:[%s1391_s3 + $0x24] sm:$0xf] }
  0x1f   : > { %367 = vmatpush.bf16.msra.mxu1 %v913_v46  ;;  %1086 = vset.pattern.permute.xlu0 %v1103_v8  ;;  %v966_v24 = vld [vmem:[%s1391_s3 + $0x28] sm:$0xf0]  ;;  %v965_v25 = vor.u32 %v1061_v22, %v964_v21  ;;  %v956_v27 = vld [vmem:[%s1391_s3 + $0x10] sm:$0xf]  ;;  %v1059_v28 = vld [vmem:[%s1391_s3 + $0x14] sm:$0xf0] }
  0x20   : > { %1088 = vset.pattern.permute.xlu1 %v1103_v8  ;;  %510 = vperm.xlu0 %1086, %v507_v47   ;;  %v969_v26 = vor.u32 %v1060_v23, %v966_v24  ;;  %v1058_v29 = vld [vmem:[%s1391_s3 + $0x14] sm:$0xf]  ;;  %v958_v30 = vld [vmem:[%s1391_s3 + $0x18] sm:$0xf0]  ;;  %v957_v31 = vor.u32 %v1059_v28, %v956_v27  ;;  %v948_v34 = vld [vmem:[%s1391_s3] sm:$0xf] }
  0x21   : > { %513 = vperm.xlu1 %1088, %v1253_v48   ;;  %1090 = vset.pattern.permute.xlu2 %v1104_v16  ;;  %v961_v33 = vor.u32 %v1058_v29, %v958_v30  ;;  %v1057_v35 = vld [vmem:[%s1391_s3 + $0x4] sm:$0xf0]  ;;  %v1056_v36 = vld [vmem:[%s1391_s3 + $0x4] sm:$0xf]  ;;  %v516_v45 = vand.u32 127, %v515_v42  ;;  %vm523_vm2 = vcmask 130048  }
  0x22   : > { %354 = vmatpush.bf16.msra.mxu0 %v901_v54  ;;  %645 = vperm.xlu2 %1090, %v507_v47   ;;  %v949_v37 = vor.u32 %v1057_v35, %v948_v34 }
  0x23   : > { %368 = vmatpush.bf16.msra.mxu1 %v905_v56  ;;  %482 = vmatpush.bf16.msra.mxu2 %v981_v9 }
  0x24   : > { %496 = vmatpush.bf16.msra.mxu3 %v985_v10  ;;  %v393_v10 = vld [vmem:[%s1392_s4] sm:$0x3] }
  0x25   : > { %v395_v13 = vperm.slane %v393_v10, 0  ;;  %v396_v14 = vperm.slane %v393_v10, 1 }
  0x26   : > { %355 = vmatpush.bf16.msra.mxu0 %v893_v2 }
  0x27   : > { %369 = vmatpush.bf16.msra.mxu1 %v897_v3  ;;  %483 = vmatpush.bf16.msra.mxu2 %v973_v19 }
  0x28   : > { %497 = vmatpush.bf16.msra.mxu3 %v977_v20  ;;  %1092 = vset.pattern.permute.xlu0 %v1102_v32 }
  0x29   : > { %1091 = vset.pattern.permute.xlu1 %v1102_v32  ;;  %v950_v32 = vld [vmem:[%s1391_s3 + $0x8] sm:$0xf0] }
  0x2a   : > { %356 = vmatpush.bf16.msra.mxu0 %v885_v15  ;;  %716 = vperm.xlu1 %1091, %v1253_v48   ;;  %v953_v38 = vor.u32 %v1056_v36, %v950_v32 }
  0x2b   : > { %370 = vmatpush.bf16.msra.mxu1 %v889_v17  ;;  %648 = vperm.xlu2 %1090, %v1253_v48   ;;  %v1105_v48 = vmov 0.0  }
  0x2c   : > { %484 = vmatpush.bf16.msra.mxu2 %v965_v25  ;;  %498 = vmatpush.bf16.msra.mxu3 %v969_v26 }
  0x2d   : > { %357 = vmatmul.bf16.vlgmr.msra.gmra.mxu0 %v1039_v18 }
  0x2e   : > { %371 = vmatmul.bf16.vlgmr.msra.gmra.mxu1 %v1039_v18 }
  0x30   : > { %485 = vmatpush.bf16.msra.mxu2 %v957_v31  ;;  %499 = vmatpush.bf16.msra.mxu3 %v961_v33 }
  0x34   : > { %486 = vmatpush.bf16.msra.mxu2 %v949_v37  ;;  %500 = vmatpush.bf16.msra.mxu3 %v953_v38 }
  0x37   : > { %487 = vmatmul.bf16.vlgmr.msra.gmra.mxu2 %v1039_v18  ;;  %501 = vmatmul.bf16.vlgmr.msra.gmra.mxu3 %v1039_v18 }
  0x72   : > { %v714_v50 = vpop.permute.xlu2 %713 }
  0x73   : > { %vm718_vm6 = vcmp.eq.s32.totalorder %v714_v50, %v516_v45 }
  0x74   : > { %v1028_v57 = vsel %vm718_vm6, 1.0, %v1105_v48 }
  0x7c   : > { %v646_v54 = vpop.permute.xlu2 %645 }
  0x7d   : > { %vm650_vm5 = vcmp.eq.s32.totalorder %v646_v54, %v516_v45 }
  0x7e   : > { %v1022_v56 = vsel %vm650_vm5, 1.0, %v1105_v48 }
  0x85   : > { %v649_v59 = vpop.permute.xlu2 %648 }
  0x86   : > { %vm651_vm8 = vcmp.eq.s32.totalorder %v649_v59, %v516_v45 }
  0x87   : > { %v1023_v61 = vsel %vm651_vm8, 1.0, %v1105_v48 }
  0x89   : > { %v578_v39 = vpop.permute.xlu0 %577 }
  0x8a   : > { %v581_v43 = vpop.permute.xlu1 %580  ;;  %vm582_vm1 = vcmp.eq.s32.totalorder %v578_v39, %v516_v45 }
  0x8b   : > { %v1016_v52 = vsel %vm582_vm1, 1.0, %v1105_v48  ;;  %vm583_vm4 = vcmp.eq.s32.totalorder %v581_v43, %v516_v45 }
  0x8c   : > { %v1017_v55 = vsel %vm583_vm4, 1.0, %v1105_v48 }
  0x92   : > { %v511_v44 = vpop.permute.xlu0 %510 }
  0x93   : > { %vm517_vm0 = vcmp.eq.s32.totalorder %v511_v44, %v516_v45  ;;  %v514_v51 = vpop.permute.xlu1 %513 }
  0x94   : > { %v1010_v49 = vsel %vm517_vm0, 1.0, %v1105_v48  ;;  %vm518_vm3 = vcmp.eq.s32.totalorder %v514_v51, %v516_v45 }
  0x95   : > { %v1011_v53 = vsel %vm518_vm3, 1.0, %v1105_v48 }
  0x9c   : > { %v717_v58 = vpop.permute.xlu1 %716 }
  0x9d   : > { %vm719_vm7 = vcmp.eq.s32.totalorder %v717_v58, %v516_v45 }
  0x9e   : > { %v1029_v60 = vsel %vm719_vm7, 1.0, %v1105_v48 }
  0xaa   : > { %v358_v40 = vpop.f32.mrf.mxu0 }
  0xab   : > { %v372_v41 = vpop.f32.mrf.mxu1 }
  0xb2   : > { %v360_v46 = vpop.f32.mrf.mxu0 }
  0xb3   : > { %v374_v47 = vpop.f32.mrf.mxu1  ;;  %544 = vmatpush.msrb.mxu0 %v360_v46  ;;  %608 = vmatpush.msrb.mxu2 %v360_v46 }
  0xb4   : > { %567 = vmatpush.msrb.mxu1 %v374_v47  ;;  %631 = vmatpush.msrb.mxu3 %v374_v47 }
  0xb5   : > { %545 = vmatpush.msrb.mxu0 %v358_v40  ;;  %609 = vmatpush.msrb.mxu2 %v358_v40 }
  0xb6   : > { %568 = vmatpush.msrb.mxu1 %v372_v41  ;;  %632 = vmatpush.msrb.mxu3 %v372_v41 }
  0xb7   : > { %1012 = vmatmul.msk.f32.vlgmr.msrb.gmra.mxu0 %vm523_vm2, %v1010_v49  ;;  %1014 = vmatmul.msk.f32.vlgmr.msrb.gmra.mxu1 %vm523_vm2, %v1010_v49 }
  0xb8   : > { %1018 = vmatmul.msk.f32.vlgmr.msrb.gmra.mxu2 %vm523_vm2, %v1016_v52  ;;  %1020 = vmatmul.msk.f32.vlgmr.msrb.gmra.mxu3 %vm523_vm2, %v1016_v52 }
  0xb9   : > { %676 = vmatpush.msra.mxu0 %v360_v46  ;;  %699 = vmatpush.msra.mxu1 %v374_v47 }
  0xba   : > { %744 = vmatpush.msra.mxu2 %v360_v46  ;;  %767 = vmatpush.msra.mxu3 %v374_v47  ;;  %v488_v62 = vpop.f32.mrf.mxu2  ;;  %v502_v63 = vpop.f32.mrf.mxu3 }
  0xbb   : > { %677 = vmatpush.msra.mxu0 %v358_v40  ;;  %700 = vmatpush.msra.mxu1 %v372_v41  ;;  %v489_v21 = vadd.f32 %v488_v62, %v395_v13  ;;  %v503_v22 = vadd.f32 %v502_v63, %v396_v14 }
  0xbc   : > { %745 = vmatpush.msra.mxu2 %v358_v40  ;;  %768 = vmatpush.msra.mxu3 %v372_v41 }
  0xbf   : > { %1013 = vmatmul.msk.f32.gmra.mxu0 %vm523_vm2, %v1011_v53  ;;  %1015 = vmatmul.msk.f32.gmra.mxu1 %vm523_vm2, %v1011_v53 }
  0xc0   : > { %1019 = vmatmul.msk.f32.gmra.mxu2 %vm523_vm2, %v1017_v55  ;;  %1021 = vmatmul.msk.f32.gmra.mxu3 %vm523_vm2, %v1017_v55 }
  0xc2   : > { %v490_v0 = vpop.f32.mrf.mxu2  ;;  %v504_v1 = vpop.f32.mrf.mxu3 }
  0xc3   : > { %v491_v40 = vadd.f32 %v490_v0, %v395_v13  ;;  %v505_v41 = vadd.f32 %v504_v1, %v396_v14 }
  0xc7   : > { %1024 = vmatmul.msk.f32.vlgmr.msra.gmra.mxu0 %vm523_vm2, %v1022_v56  ;;  %1026 = vmatmul.msk.f32.vlgmr.msra.gmra.mxu1 %vm523_vm2, %v1022_v56 }
  0xc8   : > { %1030 = vmatmul.msk.f32.vlgmr.msra.gmra.mxu2 %vm523_vm2, %v1028_v57  ;;  %1032 = vmatmul.msk.f32.vlgmr.msra.gmra.mxu3 %vm523_vm2, %v1028_v57 }
  0xcf   : > { %1025 = vmatmul.msk.f32.gmra.mxu0 %vm523_vm2, %v1023_v61  ;;  %1027 = vmatmul.msk.f32.gmra.mxu1 %vm523_vm2, %v1023_v61 }
  0xd0   : > { %1031 = vmatmul.msk.f32.gmra.mxu2 %vm523_vm2, %v1029_v60  ;;  %1033 = vmatmul.msk.f32.gmra.mxu3 %vm523_vm2, %v1029_v60 }
 0x134   : > { %v547_v2 = vpop.f32.mrf.mxu0  ;;  %v570_v3 = vpop.f32.mrf.mxu1 }
 0x13b   : > { %v611_v4 = vpop.f32.mrf.mxu2  ;;  %v634_v5 = vpop.f32.mrf.mxu3 }
 0x13c   : > { %v550_v6 = vpop.f32.mrf.mxu0  ;;  %v573_v7 = vpop.f32.mrf.mxu1  ;;  %v640_v15 = vmax.f32 %v547_v2, %v611_v4  ;;  %v641_v16 = vmax.f32 %v570_v3, %v634_v5 }
 0x143   : > { %v614_v8 = vpop.f32.mrf.mxu2  ;;  %v637_v9 = vpop.f32.mrf.mxu3 }
 0x144   : > { %v679_v11 = vpop.f32.mrf.mxu0  ;;  %v702_v12 = vpop.f32.mrf.mxu1  ;;  %v642_v27 = vmax.f32 %v550_v6, %v614_v8  ;;  %v643_v28 = vmax.f32 %v573_v7, %v637_v9 }
 0x145   : > { %v708_v17 = vmax.f32 %v640_v15, %v679_v11  ;;  %v709_v18 = vmax.f32 %v641_v16, %v702_v12 }
 0x14b   : > { %v747_v19 = vpop.f32.mrf.mxu2  ;;  %v770_v20 = vpop.f32.mrf.mxu3 }
 0x14c   : > { %v776_v23 = vmax.f32 %v708_v17, %v747_v19  ;;  %v777_v24 = vmax.f32 %v709_v18, %v770_v20  ;;  %v682_v29 = vpop.f32.mrf.mxu0  ;;  %v705_v30 = vpop.f32.mrf.mxu1 }
 0x14d   : > { %v710_v36 = vmax.f32 %v642_v27, %v682_v29  ;;  %v711_v32 = vmax.f32 %v643_v28, %v705_v30 }
 0x14e   : > { %v780_v25 = vadd.f32 %v776_v23, %v489_v21  ;;  %v781_v26 = vadd.f32 %v777_v24, %v503_v22 }
 0x150   : > { %vm784_vm9 = vcmp.gt.f32.partialorder %v780_v25, 0.0  ;;  %v788_v31 = vmul.f32 0.2, %v780_v25  ;;  %vm785_vm10 = vcmp.gt.f32.partialorder %v781_v26, 0.0  ;;  %v789_v33 = vmul.f32 0.2, %v781_v26 }
 0x152   : > { %v792_v34 = vsel %vm784_vm9, %v780_v25, %v788_v31  ;;  %v793_v35 = vsel %vm785_vm10, %v781_v26, %v789_v33 }
 0x153   : > { %v796_v37 = vpack.c.bf16 %v793_v35, %v792_v34  ;;  %v750_v38 = vpop.f32.mrf.mxu2  ;;  %v773_v39 = vpop.f32.mrf.mxu3 }
 0x154   : > { %v778_v42 = vmax.f32 %v710_v36, %v750_v38  ;;  %v779_v43 = vmax.f32 %v711_v32, %v773_v39 }
 0x155   : > { %798 = vst [vmem:[%s244_s25] sm:$0xff] %v796_v37 }
 0x156   : > { %v782_v44 = vadd.f32 %v778_v42, %v491_v40  ;;  %v783_v45 = vadd.f32 %v779_v43, %v505_v41 }
 0x158   : > { %vm786_vm11 = vcmp.gt.f32.partialorder %v782_v44, 0.0  ;;  %v790_v46 = vmul.f32 0.2, %v782_v44  ;;  %vm787_vm12 = vcmp.gt.f32.partialorder %v783_v45, 0.0  ;;  %v791_v47 = vmul.f32 0.2, %v783_v45 }
 0x15a   : > { %v794_v48 = vsel %vm786_vm11, %v782_v44, %v790_v46  ;;  %v795_v49 = vsel %vm787_vm12, %v783_v45, %v791_v47 }
 0x15b   : > { %v797_v50 = vpack.c.bf16 %v795_v49, %v794_v48 }
 0x15d   : > { %799 = vst [vmem:[%s244_s25 + $0x8] sm:$0xff] %v797_v50 }
 0x15e PF: > { %s15_s18 = sadd.s32 1, %s1099_s18  }
 0x15f   : > { %p12_p4 = scmp.ge.s32.totalorder %s15_s18, 4  }
 0x161   :  { %14 = sbr.rel (!%p12_p4) target bundleno = 1 (0x1), region = 73 }

// kernel: _lambda_.6
= control target key start
LH: loop header
LB: loop body
LE: loop exit
PB: predicated region body
PF: predicated region fallthrough
CT: control target
= control target key end

     0   :  { %s752_s18 = smov 0   ;;  %s817_s0 = inlined_call_operand.vmem [shape: bf16[2,16,64], index: 0, kind: input, shape index: {}]   ;;  %s818_s1 = inlined_call_operand.vmem [shape: s32[2,16,4], index: 1, kind: input, shape index: {}]   ;;  %s819_s2 = inlined_call_operand.vmem [shape: bf16[64,64], index: 2, kind: input, shape index: {}]   ;;  %s820_s3 = inlined_call_operand.vmem [shape: bf16[64,64], index: 3, kind: input, shape index: {}]   ;;  %s821_s4 = inlined_call_operand.vmem [shape: f32[1,64], index: 4, kind: input, shape index: {}]   ;;  %s822_s5 = inlined_call_operand.vmem [shape: bf16[2,16,64], index: 5, kind: output, shape index: {}]  }
   0x1 LB: > { %s608_s19 = sadd.s32 4294967295, %s715_s18   ;;  %p612_p0 = scmp.ge.s32.totalorder %s715_s18, 1  ;;  %s715_s18 = sphi %s752_s18, %s15_s18  }
   0x2   : > { %p197_p1 = scmp.lt.s32.totalorder %s715_s18, 3 }
   0x4   : > { %p198_p2 = pnand %p612_p0, %p197_p1 }
   0x5   : > { %p230_p3 = scmp.lt.s32.totalorder (!%p198_p2), %s608_s19, 1 }
   0x6   : > { %201 = sbr.rel (%p198_p2) target bundleno = 333 (0x14d), region = 40 }
   0xb   : > { %v682_v0 = vld [vmem:[%s819_s2 + $0x18] sm:$0xff]  ;;  %v717_v1 = vmov 0   ;;  %v681_v2 = vld [vmem:[%s819_s2 + $0x10] sm:$0xff]  ;;  %s824_s19 = smov (!%p230_p3, %s608_s19), 1  ;;  %v718_v3 = vmov 2   ;;  %v680_v4 = vld [vmem:[%s819_s2 + $0x8] sm:$0xff]  ;;  %v361_v17 = vlaneseq }
   0xc   : > { %700 = vset.pattern.permute.xlu0 %v717_v1  ;;  %702 = vset.pattern.permute.xlu1 %v717_v1  ;;  %s676_s24 = sshll.u32 %s824_s19, 4  ;;  %s675_s30 = sshll.u32 %s824_s19, 3  ;;  %v679_v7 = vld [vmem:[%s819_s2] sm:$0xff]  ;;  %vm285_vm0 = vcmask 523264   ;;  %v719_v9 = vmov 1   ;;  %v720_v10 = vmov 3  }
   0xd   : > { %293 = vmatpush.bf16.msra.mxu0 %v682_v0  ;;  %704 = vset.pattern.permute.xlu2 %v718_v3  ;;  %s239_s29 = scalar_lea.vmem %s818_s1, %s676_s24  ;;  %s234_s10 = scalar_lea.vmem %s817_s0, %s675_s30  ;;  %v686_v11 = vld [vmem:[%s820_s3 + $0x18] sm:$0xff]  ;;  %v685_v12 = vld [vmem:[%s820_s3 + $0x10] sm:$0xff]  ;;  %v684_v13 = vld [vmem:[%s820_s3 + $0x8] sm:$0xff]  ;;  %v362_v20 = vand.u32 127, %v361_v17  ;;  %v721_v22 = vmov 0.0   ;;  %vm369_vm3 = vcmask 130048  }
   0xe   : > { %v353_v5 = vld [vmem:[%s239_s29] sm:$0xff]  ;;  %v354_v6 = vld [vmem:[%s239_s29 + $0x8] sm:$0xff]  ;;  %343 = vmatpush.bf16.msra.mxu1 %v686_v11  ;;  %s244_s25 = scalar_lea.vmem %s822_s5, %s675_s30  ;;  %vm538_vm11 = vcmask 519168  }
   0xf   : > { %356 = vperm.xlu0 %700, %v353_v5   ;;  %359 = vperm.xlu1 %702, %v354_v6   ;;  %v678_v8 = vld [vmem:[%s234_s10] sm:$0xff] }
  0x10   : > { %443 = vperm.xlu2 %704, %v353_v5   ;;  %v683_v14 = vld [vmem:[%s820_s3] sm:$0xff] }
  0x11   : > { %294 = vmatpush.bf16.msra.mxu0 %v681_v2  ;;  %v708_v40 = vld [vmem:[%s821_s4] ss:$0 sm:$0xff] }
  0x12   : > { %344 = vmatpush.bf16.msra.mxu1 %v685_v12 }
  0x15   : > { %295 = vmatpush.bf16.msra.mxu0 %v680_v4 }
  0x16   : > { %345 = vmatpush.bf16.msra.mxu1 %v684_v13 }
  0x17   : > { %701 = vset.pattern.permute.xlu0 %v719_v9  ;;  %703 = vset.pattern.permute.xlu1 %v719_v9 }
  0x18   : > { %400 = vperm.xlu0 %701, %v353_v5   ;;  %403 = vperm.xlu1 %703, %v354_v6  }
  0x19   : > { %296 = vmatpush.bf16.msra.mxu0 %v679_v7  ;;  %705 = vset.pattern.permute.xlu2 %v720_v10 }
  0x1a   : > { %486 = vperm.xlu2 %705, %v353_v5   ;;  %346 = vmatpush.bf16.msra.mxu1 %v683_v14 }
  0x1c   : > { %639 = vmatmul.msk.bf16.vlgmr.msra.gmra.mxu0 %vm285_vm0, %v678_v8 }
  0x1d   : > { %656 = vmatmul.msk.bf16.vlgmr.msra.gmra.mxu1 %vm285_vm0, %v678_v8 }
  0x20   : > { %707 = vset.pattern.permute.xlu0 %v720_v10  ;;  %706 = vset.pattern.permute.xlu1 %v718_v3 }
  0x21   : > { %446 = vperm.xlu1 %706, %v354_v6  }
  0x22   : > { %489 = vperm.xlu2 %705, %v354_v6  }
  0x6a   : > { %v444_v24 = vpop.permute.xlu2 %443 }
  0x6b   : > { %vm448_vm7 = vcmp.eq.s32.totalorder %v444_v24, %v362_v20 }
  0x6c   : > { %v665_v31 = vsel %vm448_vm7, 1.0, %v721_v22 }
  0x74   : > { %v487_v29 = vpop.permute.xlu2 %486 }
  0x75   : > { %vm491_vm6 = vcmp.eq.s32.totalorder %v487_v29, %v362_v20 }
  0x76   : > { %v669_v30 = vsel %vm491_vm6, 1.0, %v721_v22 }
  0x7c   : > { %v490_v33 = vpop.permute.xlu2 %489 }
  0x7d   : > { %vm492_vm9 = vcmp.eq.s32.totalorder %v490_v33, %v362_v20 }
  0x7e   : > { %v670_v35 = vsel %vm492_vm9, 1.0, %v721_v22 }
  0x81   : > { %v357_v15 = vpop.permute.xlu0 %356  ;;  %v360_v18 = vpop.permute.xlu1 %359 }
  0x82   : > { %vm363_vm2 = vcmp.eq.s32.totalorder %v357_v15, %v362_v20  ;;  %vm364_vm5 = vcmp.eq.s32.totalorder %v360_v18, %v362_v20 }
  0x83   : > { %v657_v25 = vsel %vm363_vm2, 1.0, %v721_v22  ;;  %v658_v28 = vsel %vm364_vm5, 1.0, %v721_v22 }
  0x8a   : > { %v401_v19 = vpop.permute.xlu0 %400  ;;  %v404_v26 = vpop.permute.xlu1 %403 }
  0x8b   : > { %vm405_vm1 = vcmp.eq.s32.totalorder %v401_v19, %v362_v20  ;;  %vm406_vm4 = vcmp.eq.s32.totalorder %v404_v26, %v362_v20 }
  0x8c   : > { %v661_v23 = vsel %vm405_vm1, 1.0, %v721_v22  ;;  %v662_v27 = vsel %vm406_vm4, 1.0, %v721_v22 }
  0x93   : > { %v447_v32 = vpop.permute.xlu1 %446 }
  0x94   : > { %vm449_vm8 = vcmp.eq.s32.totalorder %v447_v32, %v362_v20 }
  0x95   : > { %v666_v34 = vsel %vm449_vm8, 1.0, %v721_v22 }
  0x99   : > { %v298_v16 = vpop.f32.mrf.mxu0 }
  0x9a   : > { %v348_v41 = vpop.f32.mrf.mxu1 }
  0x9b   : > { %v349_v45 = vadd.f32 %v708_v40, %v348_v41 }
  0xa1   : > { %v300_v21 = vpop.f32.mrf.mxu0 }
  0xa2   : > { %390 = vmatpush.msra.mxu2 %v300_v21  ;;  %431 = vmatpush.msra.mxu3 %v300_v21  ;;  %v350_v51 = vpop.f32.mrf.mxu1 }
  0xa3   : > { %v351_v57 = vadd.f32 %v708_v40, %v350_v51 }
  0xa4   : > { %391 = vmatpush.msra.mxu2 %v298_v16  ;;  %432 = vmatpush.msra.mxu3 %v298_v16 }
  0xa5   : > { %659 = vmatmul.msk.f32.vlgmr.msra.gmra.mxu2 %vm369_vm3, %v657_v25  ;;  %663 = vmatmul.msk.f32.vlgmr.msra.gmra.mxu3 %vm369_vm3, %v661_v23 }
  0xa6   : > { %474 = vmatpush.msrb.mxu2 %v300_v21  ;;  %517 = vmatpush.msrb.mxu3 %v300_v21 }
  0xa8   : > { %475 = vmatpush.msrb.mxu2 %v298_v16  ;;  %518 = vmatpush.msrb.mxu3 %v298_v16 }
  0xad   : > { %660 = vmatmul.msk.f32.gmra.mxu2 %vm369_vm3, %v658_v28  ;;  %664 = vmatmul.msk.f32.gmra.mxu3 %vm369_vm3, %v662_v27 }
  0xb5   : > { %667 = vmatmul.msk.f32.vlgmr.msrb.gmra.mxu2 %vm369_vm3, %v665_v31  ;;  %671 = vmatmul.msk.f32.vlgmr.msrb.gmra.mxu3 %vm369_vm3, %v669_v30 }
  0xbd   : > { %668 = vmatmul.msk.f32.gmra.mxu2 %vm369_vm3, %v666_v34  ;;  %672 = vmatmul.msk.f32.gmra.mxu3 %vm369_vm3, %v670_v35 }
 0x128   : > { %v393_v36 = vpop.f32.mrf.mxu2  ;;  %v434_v37 = vpop.f32.mrf.mxu3 }
 0x129   : > { %v440_v42 = vmax.f32 %v393_v36, %v434_v37 }
 0x130   : > { %v396_v38 = vpop.f32.mrf.mxu2  ;;  %v437_v39 = vpop.f32.mrf.mxu3 }
 0x131   : > { %v441_v49 = vmax.f32 %v396_v38, %v437_v39 }
 0x138   : > { %v477_v43 = vpop.f32.mrf.mxu2  ;;  %v520_v44 = vpop.f32.mrf.mxu3 }
 0x139   : > { %v483_v46 = vmax.f32 %v440_v42, %v477_v43 }
 0x13b   : > { %v526_v47 = vmax.f32 %v483_v46, %v520_v44 }
 0x13d   : > { %v528_v48 = vadd.f32 %v526_v47, %v349_v45 }
 0x13f   : > { %vm530_vm10 = vcmp.gt.f32.partialorder %v528_v48, 0.0  ;;  %v532_v50 = vmul.f32 0.2, %v528_v48 }
 0x140   : > { %v480_v52 = vpop.f32.mrf.mxu2  ;;  %v523_v56 = vpop.f32.mrf.mxu3 }
 0x141   : > { %v534_v53 = vsel %vm530_vm10, %v528_v48, %v532_v50  ;;  %v484_v54 = vmax.f32 %v441_v49, %v480_v52 }
 0x142   : > { %v536_v55 = vpack.c.bf16 %v534_v53, %v534_v53 }
 0x143   : > { %v527_v58 = vmax.f32 %v484_v54, %v523_v56 }
 0x144   : > { %539 = vst.msk [vmem:[%s244_s25] sm:$0xf] %vm538_vm11, %v536_v55 }
 0x145   : > { %v529_v59 = vadd.f32 %v527_v58, %v351_v57 }
 0x147   : > { %vm531_vm12 = vcmp.gt.f32.partialorder %v529_v59, 0.0  ;;  %v533_v60 = vmul.f32 0.2, %v529_v59 }
 0x149   : > { %v535_v61 = vsel %vm531_vm12, %v529_v59, %v533_v60 }
 0x14a   : > { %v537_v62 = vpack.c.bf16 %v535_v61, %v535_v61 }
 0x14c   : > { %540 = vst.msk [vmem:[%s244_s25 + $0x4] sm:$0xf] %vm538_vm11, %v537_v62 }
 0x14d PF: > { %s15_s18 = sadd.s32 1, %s715_s18  }
 0x14e   : > { %p12_p4 = scmp.ge.s32.totalorder %s15_s18, 4  }
 0x150   :  { %14 = sbr.rel (!%p12_p4) target bundleno = 1 (0x1), region = 73 }

// kernel: _lambda_.7
= control target key start
LH: loop header
LB: loop body
LE: loop exit
PB: predicated region body
PF: predicated region fallthrough
CT: control target
= control target key end

     0   :  { %s756_s18 = smov 0   ;;  %s821_s0 = inlined_call_operand.vmem [shape: bf16[2,16,64], index: 0, kind: input, shape index: {}]   ;;  %s822_s1 = inlined_call_operand.vmem [shape: s32[2,16,4], index: 1, kind: input, shape index: {}]   ;;  %s823_s2 = inlined_call_operand.vmem [shape: bf16[64,128], index: 2, kind: input, shape index: {}]   ;;  %s824_s3 = inlined_call_operand.vmem [shape: bf16[64,128], index: 3, kind: input, shape index: {}]   ;;  %s825_s4 = inlined_call_operand.vmem [shape: f32[1,128], index: 4, kind: input, shape index: {}]   ;;  %s826_s5 = inlined_call_operand.vmem [shape: bf16[2,16,128], index: 5, kind: output, shape index: {}]  }
   0x1 LB: > { %s607_s19 = sadd.s32 4294967295, %s719_s18   ;;  %p611_p0 = scmp.ge.s32.totalorder %s719_s18, 1  ;;  %s719_s18 = sphi %s756_s18, %s15_s18  }
   0x2   : > { %p197_p1 = scmp.lt.s32.totalorder %s719_s18, 3 }
   0x4   : > { %p198_p2 = pnand %p611_p0, %p197_p1 }
   0x5   : > { %p230_p3 = scmp.lt.s32.totalorder (!%p198_p2), %s607_s19, 1 }
   0x6   : > { %201 = sbr.rel (%p198_p2) target bundleno = 333 (0x14d), region = 40 }
   0xb   : > { %v681_v0 = vld [vmem:[%s823_s2 + $0x18] sm:$0xff]  ;;  %v721_v1 = vmov 0   ;;  %v680_v2 = vld [vmem:[%s823_s2 + $0x10] sm:$0xff]  ;;  %s828_s19 = smov (!%p230_p3, %s607_s19), 1  ;;  %v722_v3 = vmov 2   ;;  %v679_v4 = vld [vmem:[%s823_s2 + $0x8] sm:$0xff]  ;;  %v361_v17 = vlaneseq }
   0xc   : > { %704 = vset.pattern.permute.xlu0 %v721_v1  ;;  %706 = vset.pattern.permute.xlu1 %v721_v1  ;;  %s675_s24 = sshll.u32 %s828_s19, 4  ;;  %s674_s30 = sshll.u32 %s828_s19, 3  ;;  %v678_v7 = vld [vmem:[%s823_s2] sm:$0xff]  ;;  %vm285_vm0 = vcmask 523264   ;;  %v723_v9 = vmov 1   ;;  %v724_v10 = vmov 3  }
   0xd   : > { %293 = vmatpush.bf16.msra.mxu0 %v681_v0  ;;  %708 = vset.pattern.permute.xlu2 %v722_v3  ;;  %s239_s29 = scalar_lea.vmem %s822_s1, %s675_s24  ;;  %s234_s10 = scalar_lea.vmem %s821_s0, %s674_s30  ;;  %v685_v11 = vld [vmem:[%s824_s3 + $0x18] sm:$0xff]  ;;  %v684_v12 = vld [vmem:[%s824_s3 + $0x10] sm:$0xff]  ;;  %v683_v13 = vld [vmem:[%s824_s3 + $0x8] sm:$0xff]  ;;  %v362_v20 = vand.u32 127, %v361_v17  ;;  %v725_v22 = vmov 0.0   ;;  %vm369_vm3 = vcmask 130048  }
   0xe   : > { %v353_v5 = vld [vmem:[%s239_s29] sm:$0xff]  ;;  %v354_v6 = vld [vmem:[%s239_s29 + $0x8] sm:$0xff]  ;;  %343 = vmatpush.bf16.msra.mxu1 %v685_v11  ;;  %s244_s25 = scalar_lea.vmem %s826_s5, %s674_s30 }
   0xf   : > { %356 = vperm.xlu0 %704, %v353_v5   ;;  %359 = vperm.xlu1 %706, %v354_v6   ;;  %v677_v8 = vld [vmem:[%s234_s10] sm:$0xff] }
  0x10   : > { %443 = vperm.xlu2 %708, %v353_v5   ;;  %v682_v14 = vld [vmem:[%s824_s3] sm:$0xff] }
  0x11   : > { %294 = vmatpush.bf16.msra.mxu0 %v680_v2  ;;  %v712_v44 = vld [vmem:[%s825_s4] ss:$0 sm:$0xff] }
  0x12   : > { %344 = vmatpush.bf16.msra.mxu1 %v684_v12 }
  0x15   : > { %295 = vmatpush.bf16.msra.mxu0 %v679_v4 }
  0x16   : > { %345 = vmatpush.bf16.msra.mxu1 %v683_v13 }
  0x17   : > { %705 = vset.pattern.permute.xlu0 %v723_v9  ;;  %707 = vset.pattern.permute.xlu1 %v723_v9 }
  0x18   : > { %400 = vperm.xlu0 %705, %v353_v5   ;;  %403 = vperm.xlu1 %707, %v354_v6  }
  0x19   : > { %296 = vmatpush.bf16.msra.mxu0 %v678_v7  ;;  %709 = vset.pattern.permute.xlu2 %v724_v10 }
  0x1a   : > { %486 = vperm.xlu2 %709, %v353_v5   ;;  %346 = vmatpush.bf16.msra.mxu1 %v682_v14 }
  0x1c   : > { %638 = vmatmul.msk.bf16.vlgmr.msra.gmra.mxu0 %vm285_vm0, %v677_v8 }
  0x1d   : > { %655 = vmatmul.msk.bf16.vlgmr.msra.gmra.mxu1 %vm285_vm0, %v677_v8 }
  0x20   : > { %711 = vset.pattern.permute.xlu0 %v724_v10  ;;  %710 = vset.pattern.permute.xlu1 %v722_v3 }
  0x21   : > { %446 = vperm.xlu1 %710, %v354_v6  }
  0x22   : > { %489 = vperm.xlu2 %709, %v354_v6  }
  0x6a   : > { %v444_v24 = vpop.permute.xlu2 %443 }
  0x6b   : > { %vm448_vm7 = vcmp.eq.s32.totalorder %v444_v24, %v362_v20 }
  0x6c   : > { %v664_v31 = vsel %vm448_vm7, 1.0, %v725_v22 }
  0x74   : > { %v487_v29 = vpop.permute.xlu2 %486 }
  0x75   : > { %vm491_vm6 = vcmp.eq.s32.totalorder %v487_v29, %v362_v20 }
  0x76   : > { %v668_v30 = vsel %vm491_vm6, 1.0, %v725_v22 }
  0x7c   : > { %v490_v33 = vpop.permute.xlu2 %489 }
  0x7d   : > { %vm492_vm9 = vcmp.eq.s32.totalorder %v490_v33, %v362_v20 }
  0x7e   : > { %v669_v35 = vsel %vm492_vm9, 1.0, %v725_v22 }
  0x81   : > { %v357_v15 = vpop.permute.xlu0 %356  ;;  %v360_v18 = vpop.permute.xlu1 %359 }
  0x82   : > { %vm363_vm2 = vcmp.eq.s32.totalorder %v357_v15, %v362_v20  ;;  %vm364_vm5 = vcmp.eq.s32.totalorder %v360_v18, %v362_v20 }
  0x83   : > { %v656_v25 = vsel %vm363_vm2, 1.0, %v725_v22  ;;  %v657_v28 = vsel %vm364_vm5, 1.0, %v725_v22 }
  0x8a   : > { %v401_v19 = vpop.permute.xlu0 %400  ;;  %v404_v26 = vpop.permute.xlu1 %403 }
  0x8b   : > { %vm405_vm1 = vcmp.eq.s32.totalorder %v401_v19, %v362_v20  ;;  %vm406_vm4 = vcmp.eq.s32.totalorder %v404_v26, %v362_v20 }
  0x8c   : > { %v660_v23 = vsel %vm405_vm1, 1.0, %v725_v22  ;;  %v661_v27 = vsel %vm406_vm4, 1.0, %v725_v22 }
  0x93   : > { %v447_v32 = vpop.permute.xlu1 %446 }
  0x94   : > { %vm449_vm8 = vcmp.eq.s32.totalorder %v447_v32, %v362_v20 }
  0x95   : > { %v665_v34 = vsel %vm449_vm8, 1.0, %v725_v22 }
  0x99   : > { %v298_v16 = vpop.f32.mrf.mxu0 }
  0x9a   : > { %v348_v40 = vpop.f32.mrf.mxu1 }
  0x9b   : > { %v349_v46 = vadd.f32 %v712_v44, %v348_v40 }
  0xa1   : > { %v300_v21 = vpop.f32.mrf.mxu0 }
  0xa2   : > { %390 = vmatpush.msra.mxu2 %v300_v21  ;;  %431 = vmatpush.msra.mxu3 %v300_v21  ;;  %v350_v49 = vpop.f32.mrf.mxu1 }
  0xa3   : > { %v351_v54 = vadd.f32 %v712_v44, %v350_v49 }
  0xa4   : > { %391 = vmatpush.msra.mxu2 %v298_v16  ;;  %432 = vmatpush.msra.mxu3 %v298_v16 }
  0xa5   : > { %658 = vmatmul.msk.f32.vlgmr.msra.gmra.mxu2 %vm369_vm3, %v656_v25  ;;  %662 = vmatmul.msk.f32.vlgmr.msra.gmra.mxu3 %vm369_vm3, %v660_v23 }
  0xa6   : > { %474 = vmatpush.msrb.mxu2 %v300_v21  ;;  %517 = vmatpush.msrb.mxu3 %v300_v21 }
  0xa8   : > { %475 = vmatpush.msrb.mxu2 %v298_v16  ;;  %518 = vmatpush.msrb.mxu3 %v298_v16 }
  0xad   : > { %659 = vmatmul.msk.f32.gmra.mxu2 %vm369_vm3, %v657_v28  ;;  %663 = vmatmul.msk.f32.gmra.mxu3 %vm369_vm3, %v661_v27 }
  0xb5   : > { %666 = vmatmul.msk.f32.vlgmr.msrb.gmra.mxu2 %vm369_vm3, %v664_v31  ;;  %670 = vmatmul.msk.f32.vlgmr.msrb.gmra.mxu3 %vm369_vm3, %v668_v30 }
  0xbd   : > { %667 = vmatmul.msk.f32.gmra.mxu2 %vm369_vm3, %v665_v34  ;;  %671 = vmatmul.msk.f32.gmra.mxu3 %vm369_vm3, %v669_v35 }
 0x128   : > { %v393_v36 = vpop.f32.mrf.mxu2  ;;  %v434_v37 = vpop.f32.mrf.mxu3 }
 0x129   : > { %v440_v41 = vmax.f32 %v393_v36, %v434_v37 }
 0x130   : > { %v396_v38 = vpop.f32.mrf.mxu2  ;;  %v437_v39 = vpop.f32.mrf.mxu3 }
 0x131   : > { %v441_v48 = vmax.f32 %v396_v38, %v437_v39 }
 0x138   : > { %v477_v42 = vpop.f32.mrf.mxu2  ;;  %v520_v43 = vpop.f32.mrf.mxu3 }
 0x139   : > { %v483_v45 = vmax.f32 %v440_v41, %v477_v42 }
 0x13b   : > { %v526_v47 = vmax.f32 %v483_v45, %v520_v43 }
 0x13d   : > { %v528_v51 = vadd.f32 %v526_v47, %v349_v46 }
 0x13f   : > { %v532_v56 = vmul.f32 0.2, %v528_v51  ;;  %vm530_vm10 = vcmp.gt.f32.partialorder %v528_v51, 0.0 }
 0x140   : > { %v480_v50 = vpop.f32.mrf.mxu2  ;;  %v523_v53 = vpop.f32.mrf.mxu3 }
 0x141   : > { %v484_v52 = vmax.f32 %v441_v48, %v480_v50  ;;  %v534_v59 = vsel %vm530_vm10, %v528_v51, %v532_v56 }
 0x143   : > { %v527_v55 = vmax.f32 %v484_v52, %v523_v53 }
 0x145   : > { %v529_v57 = vadd.f32 %v527_v55, %v351_v54 }
 0x147   : > { %vm531_vm11 = vcmp.gt.f32.partialorder %v529_v57, 0.0  ;;  %v533_v58 = vmul.f32 0.2, %v529_v57 }
 0x149   : > { %v535_v60 = vsel %vm531_vm11, %v529_v57, %v533_v58 }
 0x14a   : > { %v689_v61 = vpack.c.bf16 %v535_v60, %v534_v59 }
 0x14c   : > { %690 = vst [vmem:[%s244_s25] sm:$0xff] %v689_v61  }
 0x14d PF: > { %s15_s18 = sadd.s32 1, %s719_s18  }
 0x14e   : > { %p12_p4 = scmp.ge.s32.totalorder %s15_s18, 4  }
 0x150   :  { %14 = sbr.rel (!%p12_p4) target bundleno = 1 (0x1), region = 73 }

// kernel: _lambda_.9
= control target key start
LH: loop header
LB: loop body
LE: loop exit
PB: predicated region body
PF: predicated region fallthrough
CT: control target
= control target key end

     0   :  { %s1229_s21 = smov 0   ;;  %s1231_s22 = smov 0   ;;  %s1382_s0 = inlined_call_operand.vmem [shape: bf16[2,16,64], index: 0, kind: input, shape index: {}]   ;;  %s1383_s1 = inlined_call_operand.vmem [shape: bf16[2,16,64], index: 1, kind: input, shape index: {}]   ;;  %s1384_s2 = inlined_call_operand.vmem [shape: bf16[2,16,128], index: 2, kind: input, shape index: {}]   ;;  %s1385_s3 = inlined_call_operand.vmem [shape: bf16[2,16,256], index: 3, kind: input, shape index: {}]   ;;  %s1386_s4 = inlined_call_operand.vmem [shape: bf16[512,128], index: 4, kind: input, shape index: {}]   ;;  %s1387_s5 = inlined_call_operand.vmem [shape: f32[1,128], index: 5, kind: input, shape index: {}]   ;;  %s1388_s6 = inlined_call_operand.vmem [shape: f32[2,1,256], index: 6, kind: output, shape index: {}]  }
   0x1   :  { %s1233_s23 = smov 0  }
   0x2 LB: > { %s28_s24 = sadd.s32 1, %s1184_s22  ;;  %p939_p0 = scmp.ge.s32.totalorder %s1188_s23, 1  ;;  %s1188_s23 = sphi %s1233_s23, %s16_s23   ;;  %s1184_s22 = sphi %s1231_s22, %s1390_s22   ;;  %s1180_s21 = sphi %s1229_s21, %s1389_s21  }
   0x3   : > { %p30_p1 = scmp.ge.s32.totalorder %s28_s24, 2  ;;  %p283_p2 = scmp.lt.s32.totalorder %s1188_s23, 3 }
   0x5   : > { %s1392_s24 = smov (%p30_p1, %s28_s24), 0  ;;  %p284_p3 = pnand %p939_p0, %p283_p2 }
   0x6   : > { %p345_p4 = scmp.lt.s32.totalorder (!%p284_p3), %s1180_s21, 1  ;;  %s1190_s14 = smov (!%p284_p3), 64  }
   0x7   : > { %287 = sbr.rel (%p284_p3) target bundleno = 325 (0x145), region = 44 }
   0xc   : > { %v1126_v0 = vld [vmem:[%s1386_s4 + $0xb8] sm:$0xff]  ;;  %s1394_s21 = smov (!%p345_p4, %s1180_s21), 1  ;;  %v1125_v3 = vld [vmem:[%s1386_s4 + $0xb0] sm:$0xff]  ;;  %v1124_v8 = vld [vmem:[%s1386_s4 + $0xa8] sm:$0xff]  ;;  %vm397_vm0 = vcmask 519168   ;;  %vm410_vm1 = vcmask 1043968  }
   0xd   : > { %v1134_v1 = vld [vmem:[%s1386_s4 + $0xf8] sm:$0xff]  ;;  %733 = vmatpush.bf16.msra.mxu2 %v1126_v0  ;;  %v1133_v4 = vld [vmem:[%s1386_s4 + $0xf0] sm:$0xff]  ;;  %s1271_s15 = sshll.u32 %s1394_s21, 3  ;;  %s1098_s16 = sshll.u32 %s1394_s21, 4  ;;  %v1132_v9 = vld [vmem:[%s1386_s4 + $0xe8] sm:$0xff]  ;;  %v1191_v54 = vmov -inf  }
   0xe   : > { %v1118_v2 = vld [vmem:[%s1386_s4 + $0x78] sm:$0xff]  ;;  %747 = vmatpush.bf16.msra.mxu3 %v1134_v1  ;;  %v1117_v6 = vld [vmem:[%s1386_s4 + $0x70] sm:$0xff]  ;;  %s362_s25 = scalar_lea.vmem %s1383_s1, %s1271_s15  ;;  %s372_s28 = scalar_lea.vmem %s1384_s2, %s1271_s15  ;;  %v1116_v12 = vld [vmem:[%s1386_s4 + $0x68] sm:$0xff]  ;;  %393 = vst [vmem:[#allocation3] sm:$0x1] %v1191_v54  ;;  %v1192_v55 = vmov 0.0  }
   0xf   : > { %v1110_v5 = vld [vmem:[%s1386_s4 + $0x38] sm:$0xff]  ;;  %719 = vmatpush.bf16.msra.mxu1 %v1118_v2  ;;  %v1109_v7 = vld [vmem:[%s1386_s4 + $0x30] sm:$0xff]  ;;  %s383_s11 = scalar_lea.vmem %s1385_s3, %s1098_s16  ;;  %v400_v10 = vld [vmem:[%s362_s25] sm:$0xf]  ;;  %s352_s19 = scalar_lea.vmem %s1382_s0, %s1271_s15  ;;  %394 = vst [vmem:[#allocation4] sm:$0x1] %v1192_v55 }
  0x10   : > { %705 = vmatpush.bf16.msra.mxu0 %v1110_v5  ;;  %v413_v11 = vld [vmem:[%s372_s28] sm:$0xf]  ;;  %v414_v13 = vld [vmem:[%s372_s28 + $0x4] sm:$0xf]  ;;  %v418_v15 = vld [vmem:[%s383_s11 + $0x8] sm:$0xff]  ;;  %404 = vrot.lane.b32.xlu0 %v400_v10, %s1190_s14  ;;  %s948_s29 = sshll.u32 %s1394_s21, 1 }
  0x11   : > { %734 = vmatpush.bf16.msra.mxu2 %v1125_v3  ;;  %415 = vst [vmem:[#allocation2 + $0x4] sm:$0xf] %v413_v11  ;;  %v417_v14 = vld [vmem:[%s383_s11] sm:$0xff]  ;;  %v1108_v16 = vld [vmem:[%s1386_s4 + $0x28] sm:$0xff]  ;;  %v1122_v22 = vld [vmem:[%s1386_s4 + $0x98] sm:$0xff]  ;;  %v1193_v11 = vmov 16.0   ;;  %s388_s8 = scalar_lea.vmem %s1388_s6, %s948_s29 }
  0x12   : > { %748 = vmatpush.bf16.msra.mxu3 %v1133_v4  ;;  %416 = vst [vmem:[#allocation2 + $0x14] sm:$0xf] %v414_v13  ;;  %v1123_v17 = vld [vmem:[%s1386_s4 + $0xa0] sm:$0xff]  ;;  %v1130_v23 = vld [vmem:[%s1386_s4 + $0xd8] sm:$0xff]  ;;  %v1121_v25 = vld [vmem:[%s1386_s4 + $0x90] sm:$0xff]  ;;  %1164 = vrcp.f32 %v1193_v11  ;;  %vm803_vm5 = vcmask 1040384  }
  0x13   : > { %720 = vmatpush.bf16.msra.mxu1 %v1117_v6  ;;  %419 = vst [vmem:[#allocation2 + $0x8] sm:$0xff] %v417_v14  ;;  %v1131_v18 = vld [vmem:[%s1386_s4 + $0xe0] sm:$0xff]  ;;  %v1114_v24 = vld [vmem:[%s1386_s4 + $0x58] sm:$0xff]  ;;  %v1129_v26 = vld [vmem:[%s1386_s4 + $0xd0] sm:$0xff] }
  0x14   : > { %706 = vmatpush.bf16.msra.mxu0 %v1109_v7  ;;  %420 = vst [vmem:[#allocation2 + $0x18] sm:$0xff] %v418_v15  ;;  %v1115_v19 = vld [vmem:[%s1386_s4 + $0x60] sm:$0xff]  ;;  %v1113_v28 = vld [vmem:[%s1386_s4 + $0x50] sm:$0xff]  ;;  %v1120_v29 = vld [vmem:[%s1386_s4 + $0x88] sm:$0xff] }
  0x15   : > { %735 = vmatpush.bf16.msra.mxu2 %v1124_v8  ;;  %v401_v20 = vld [vmem:[%s362_s25 + $0x4] sm:$0xf]  ;;  %v395_v27 = vld [vmem:[%s352_s19] sm:$0xf]  ;;  %v1106_v30 = vld [vmem:[%s1386_s4 + $0x18] sm:$0xff] }
  0x16   : > { %749 = vmatpush.bf16.msra.mxu3 %v1132_v9  ;;  %v1107_v21 = vld [vmem:[%s1386_s4 + $0x20] sm:$0xff]  ;;  %398 = vst.msk [vmem:[#allocation2] sm:$0xf] %vm397_vm0, %v395_v27  ;;  %v1128_v31 = vld [vmem:[%s1386_s4 + $0xc8] sm:$0xff]  ;;  %v1105_v34 = vld [vmem:[%s1386_s4 + $0x10] sm:$0xff] }
  0x17   : > { %721 = vmatpush.bf16.msra.mxu1 %v1116_v12  ;;  %v1112_v32 = vld [vmem:[%s1386_s4 + $0x48] sm:$0xff]  ;;  %v1119_v33 = vld [vmem:[%s1386_s4 + $0x80] sm:$0xff] }
  0x18   : > { %707 = vmatpush.bf16.msra.mxu0 %v1108_v16  ;;  %406 = vrot.lane.b32.xlu0 %v401_v20, %s1190_s14  ;;  %v1127_v35 = vld [vmem:[%s1386_s4 + $0xc0] sm:$0xff]  ;;  %v1104_v43 = vld [vmem:[%s1386_s4 + $0x8] sm:$0xff] }
  0x19   : > { %736 = vmatpush.bf16.msra.mxu2 %v1123_v17  ;;  %v396_v38 = vld [vmem:[%s352_s19 + $0x4] sm:$0xf]  ;;  %v953_v46 = vld [vmem:[#allocation2 + $0x10] sm:$0xf0]  ;;  %v1163_v56 = vld [vmem:[%s1387_s5] ss:$0 sm:$0xff] }
  0x1a   : > { %750 = vmatpush.bf16.msra.mxu3 %v1131_v18  ;;  %v959_v36 = vld [vmem:[#allocation2 + $0x8] sm:$0xf]  ;;  %399 = vst.msk [vmem:[#allocation2 + $0x10] sm:$0xf] %vm397_vm0, %v396_v38  ;;  %v1111_v40 = vld [vmem:[%s1386_s4 + $0x40] sm:$0xff]  ;;  %v1165_v18 = vpop.eup %1164  ;;  %v806_v38 = vlaneseq }
  0x1b   : > { %722 = vmatpush.bf16.msra.mxu1 %v1115_v19  ;;  %v1102_v37 = vld [vmem:[#allocation2 + $0x14] sm:$0xf0]  ;;  %v1100_v41 = vld [vmem:[#allocation2 + $0xc] sm:$0xf]  ;;  %v961_v42 = vld [vmem:[#allocation2 + $0x18] sm:$0xf0]  ;;  %vm796_vm4 = vweird.f32 %v1165_v18 }
  0x1c   : > { %708 = vmatpush.bf16.msra.mxu0 %v1107_v21  ;;  %v960_v39 = vor.u32 %v1102_v37, %v959_v36  ;;  %v1099_v44 = vld [vmem:[#allocation2 + $0x4] sm:$0xf]  ;;  %v964_v45 = vor.u32 %v1100_v41, %v961_v42  ;;  %vm808_vm6 = vcmp.lt.s32.totalorder %v806_v38, 256 }
  0x1d   : > { %737 = vmatpush.bf16.msra.mxu2 %v1122_v22  ;;  %v956_v47 = vor.u32 %v1099_v44, %v953_v46  ;;  %v1103_v48 = vld [vmem:[%s1386_s4] sm:$0xff] }
  0x1e   : > { %751 = vmatpush.bf16.msra.mxu3 %v1130_v23  ;;  %v792_v23 = vmul.f32 16.0, %v1165_v18 }
  0x1f   : > { %723 = vmatpush.bf16.msra.mxu1 %v1114_v24 }
  0x20   : > { %709 = vmatpush.bf16.msra.mxu0 %v1106_v30  ;;  %v777_v30 = vld [vmem:[#allocation4] sm:$0x1] }
  0x21   : > { %738 = vmatpush.bf16.msra.mxu2 %v1121_v25 }
  0x22   : > { %752 = vmatpush.bf16.msra.mxu3 %v1129_v26 }
  0x23   : > { %724 = vmatpush.bf16.msra.mxu1 %v1113_v28  ;;  %v793_v28 = vsub.f32 1.0, %v792_v23 }
  0x24   : > { %710 = vmatpush.bf16.msra.mxu0 %v1105_v34 }
  0x25   : > { %739 = vmatpush.bf16.msra.mxu2 %v1120_v29  ;;  %v767_v29 = vld [vmem:[#allocation3] sm:$0x1] }
  0x26   : > { %753 = vmatpush.bf16.msra.mxu3 %v1128_v31 }
  0x27   : > { %725 = vmatpush.bf16.msra.mxu1 %v1112_v32 }
  0x28   : > { %711 = vmatpush.bf16.msra.mxu0 %v1104_v43 }
  0x29   : > { %740 = vmatpush.bf16.msra.mxu2 %v1119_v33 }
  0x2a   : > { %754 = vmatpush.bf16.msra.mxu3 %v1127_v35  ;;  %v794_v35 = vmul.f32 %v1165_v18, %v793_v28 }
  0x2b   : > { %726 = vmatpush.bf16.msra.mxu1 %v1111_v40 }
  0x2c   : > { %741 = vmatmul.bf16.vlgmr.msra.gmra.mxu2 %v960_v39  ;;  %712 = vmatpush.bf16.msra.mxu0 %v1103_v48  ;;  %v795_v36 = vadd.f32 %v1165_v18, %v794_v35 }
  0x2d   : > { %755 = vmatmul.bf16.vlgmr.msra.gmra.mxu3 %v964_v45 }
  0x2e   : > { %727 = vmatmul.bf16.vlgmr.msra.gmra.mxu1 %v956_v47  ;;  %v797_v37 = vsel %vm796_vm4, %v1165_v18, %v795_v36 }
  0x82   : > { %v405_v49 = vpop.permute.xlu0 %404 }
  0x83   : > { %411 = vst.msk [vmem:[#allocation2] sm:$0xf] %vm410_vm1, %v405_v49 }
  0x8a   : > { %v407_v50 = vpop.permute.xlu0 %406  ;;  %v951_v51 = vld [vmem:[#allocation2] sm:$0xf] }
  0x8b   : > { %412 = vst.msk [vmem:[#allocation2 + $0x10] sm:$0xf] %vm410_vm1, %v407_v50 }
  0x92   : > { %v1101_v52 = vld [vmem:[#allocation2 + $0xc] sm:$0xf0] }
  0x93   : > { %v952_v53 = vor.u32 %v1101_v52, %v951_v51 }
  0x95   : > { %713 = vmatmul.bf16.vlgmr.msra.gmra.mxu0 %v952_v53 }
  0xab   : > { %v728_v57 = vpop.f32.mrf.mxu1 }
  0xaf   : > { %v742_v60 = vpop.f32.mrf.mxu2 }
  0xb0   : > { %v756_v62 = vpop.f32.mrf.mxu3 }
  0xb3   : > { %v730_v2 = vpop.f32.mrf.mxu1 }
  0xb7   : > { %v744_v5 = vpop.f32.mrf.mxu2 }
  0xb8   : > { %v758_v7 = vpop.f32.mrf.mxu3 }
 0x112   : > { %v714_v58 = vpop.f32.mrf.mxu0 }
 0x113   : > { %v715_v59 = vadd.f32 %v1163_v56, %v714_v58 }
 0x115   : > { %v729_v61 = vadd.f32 %v728_v57, %v715_v59 }
 0x117   : > { %v743_v63 = vadd.f32 %v742_v60, %v729_v61 }
 0x119   : > { %v757_v3 = vadd.f32 %v756_v62, %v743_v63 }
 0x11a   : > { %v716_v0 = vpop.f32.mrf.mxu0 }
 0x11b   : > { %v717_v1 = vadd.f32 %v1163_v56, %v716_v0  ;;  %v763_v8 = vmul.f32 0.2, %v757_v3  ;;  %vm761_vm2 = vcmp.gt.f32.partialorder %v757_v3, 0.0 }
 0x11d   : > { %v731_v4 = vadd.f32 %v730_v2, %v717_v1  ;;  %v765_v12 = vsel %vm761_vm2, %v757_v3, %v763_v8 }
 0x11f   : > { %v745_v6 = vadd.f32 %v744_v5, %v731_v4 }
 0x121   : > { %v759_v9 = vadd.f32 %v758_v7, %v745_v6 }
 0x123   : > { %vm762_vm3 = vcmp.gt.f32.partialorder %v759_v9, 0.0  ;;  %v764_v10 = vmul.f32 0.2, %v759_v9 }
 0x125   : > { %v766_v13 = vsel %vm762_vm3, %v759_v9, %v764_v10 }
 0x126   : > { %v768_v14 = vmax.f32 %v765_v12, %v766_v13  ;;  %v778_v15 = vadd.f32 %v766_v13, %v765_v12 }
 0x128   : > { %v769_v16 = vrot.slane %v768_v14, 4  ;;  %v779_v17 = vrot.slane %v778_v15, 4 }
 0x12a   : > { %v770_v19 = vmax.f32 %v768_v14, %v769_v16  ;;  %v780_v20 = vadd.f32 %v779_v17, %v778_v15 }
 0x12c   : > { %v771_v21 = vrot.slane %v770_v19, 2  ;;  %v781_v22 = vrot.slane %v780_v20, 2 }
 0x12e   : > { %v772_v24 = vmax.f32 %v770_v19, %v771_v21  ;;  %v782_v25 = vadd.f32 %v781_v22, %v780_v20 }
 0x130   : > { %v773_v26 = vrot.slane %v772_v24, 1  ;;  %v783_v27 = vrot.slane %v782_v25, 1 }
 0x132   : > { %v774_v31 = vmax.f32 %v772_v24, %v773_v26  ;;  %v784_v32 = vadd.f32 %v783_v27, %v782_v25 }
 0x134   : > { %v775_v33 = vmax.f32 %v767_v29, %v774_v31  ;;  %v785_v34 = vadd.f32 %v784_v32, %v777_v30 }
 0x136   : > { %776 = vst [vmem:[#allocation3] sm:$0x1] %v775_v33 }
 0x137   : > { %786 = vst [vmem:[#allocation4] sm:$0x1] %v785_v34 }
 0x13d   : > { %v799_v42 = vld [vmem:[#allocation3] sm:$0x1] }
 0x13e   : > { %v790_v39 = vld [vmem:[#allocation4] sm:$0x1] }
 0x13f   : > { %v798_v40 = vmul.f32 %v797_v37, %v790_v39 }
 0x141   : > { %v802_v41 = vrot.slane %v798_v40, 7 }
 0x143   : > { %v804_v43 = vsel %vm803_vm5, %v799_v42, %v802_v41 }
 0x144   : > { %810 = vst.msk [vmem:[%s388_s8] sm:$0x3] %vm808_vm6, %v804_v43 }
 0x145 PF: > { %s16_s23 = sadd.s32 1, %s1188_s23   ;;  %s1389_s21 = smov %s1184_s22 }
 0x146   : > { %p13_p5 = scmp.ge.s32.totalorder %s16_s23, 4   ;;  %s1390_s22 = smov %s1392_s24 }
 0x148   :  { %15 = sbr.rel (!%p13_p5) target bundleno = 2 (0x2), region = 91 }

</bundles_post_ra>
